<compile_context>
chip_gen: v6e
topology: v6e:2x2x1
jax: 0.10.0
libtpu: 0.0.40
codegen_flags: <defaults>
</compile_context>

<pallas_src>
import functools

import jax
import jax.numpy as jnp
from jax.experimental import pallas as pl
from jax.experimental.pallas import tpu as pltpu


def _round_up(x, m):
    return ((x + m - 1) // m) * m


def ffnn_deep_kernel(x_ref,
                     w1_ref, b1_ref,
                     w2_ref, b2_ref,
                     w3_ref, b3_ref,
                     w4_ref, b4_ref,
                     w5_ref, b5_ref,
                     out_ref):
    """Fused 5-layer MLP: (Linear+ReLU) x4 -> Linear -> sigmoid.

    x_ref is f32 and is downcast to bf16 on the VMEM tile; w*_ref are resident
    bf16 MXU inputs; b*_ref are f32. All accumulation and the elementwise
    epilogue (bias, ReLU, sigmoid) run in f32; the bf16 re-cast for the next
    layer's MXU LHS is fused into the ReLU.
    """
    x = x_ref[...].astype(jnp.bfloat16)                    # (block_b, D) bf16

    h = jnp.maximum(
        jnp.dot(x, w1_ref[...], preferred_element_type=jnp.float32)
        + b1_ref[...], 0.0).astype(jnp.bfloat16)
    # dropout = identity (eval mode)
    h = jnp.maximum(
        jnp.dot(h, w2_ref[...], preferred_element_type=jnp.float32)
        + b2_ref[...], 0.0).astype(jnp.bfloat16)
    h = jnp.maximum(
        jnp.dot(h, w3_ref[...], preferred_element_type=jnp.float32)
        + b3_ref[...], 0.0).astype(jnp.bfloat16)
    h = jnp.maximum(
        jnp.dot(h, w4_ref[...], preferred_element_type=jnp.float32)
        + b4_ref[...], 0.0).astype(jnp.bfloat16)

    logits = (jnp.dot(h, w5_ref[...], preferred_element_type=jnp.float32)
              + b5_ref[...])
    out_ref[...] = jax.nn.sigmoid(logits).astype(out_ref.dtype)


def prepare_params(params):
    """One-time parameter prep (call ONCE, outside the per-forward path).

    * Pads the classifier layer's output columns up to a multiple of 128 so
      the kernel's final store is an unmasked, lane-dense vst.
    * Casts weights to bf16 (MXU inputs) and biases to f32 (epilogue).
    Returns (prepped_params, n_classes).
    """
    (w1, b1, w2, b2, w3, b3, w4, b4, w5, b5) = params
    n_classes = w5.shape[1]
    n_pad = _round_up(n_classes, 128)

    w5p = jnp.zeros((w5.shape[0], n_pad), w5.dtype).at[:, :n_classes].set(w5)
    b5p = (jnp.zeros((1, n_pad), jnp.float32)
           .at[:, :n_classes].set(jnp.asarray(b5, jnp.float32).reshape(1, -1)))

    ws = tuple(w.astype(jnp.bfloat16) for w in (w1, w2, w3, w4, w5p))
    bs = tuple(jnp.asarray(b, jnp.float32).reshape(1, -1)
               for b in (b1, b2, b3, b4)) + (b5p,)

    prepped = (ws[0], bs[0], ws[1], bs[1], ws[2], bs[2],
               ws[3], bs[3], ws[4], bs[4])
    return prepped, n_classes


def _choose_block_b(B):
    """Batch-tile size: multiple of 16 (bf16 sublane packing), aiming for ~4
    grid steps (DMA/compute overlap) and never fewer than 2 tiles when B >= 32
    (so v7x's two TensorCores both get work)."""
    if B <= 16:
        return 16
    bb = _round_up(pl.cdiv(B, 4), 16)
    return max(16, min(bb, 1024))


def _pick_vmem_limit_bytes():
    """Generation-aware scoped-VMEM limit: ~3/4 of physical per-core VMEM
    (128 MiB v5e/v6e, 64 MiB v7x), clamped to [32, 96] MiB; conservative
    48 MiB fallback (fits v7x) if the hardware query is unavailable."""
    try:
        cap = int(pltpu.get_tpu_info().vmem_capacity_bytes)
        return int(min(96 * 2**20, max(32 * 2**20, (cap * 3) // 4)))
    except Exception:
        return 48 * 2**20


@functools.partial(jax.jit, static_argnames=("n_classes", "block_b"))
def ffnn_deep(x, prepped, n_classes, block_b=None):
    """Forward pass. `prepped` comes from prepare_params(); weights (in,out)."""
    (w1, b1, w2, b2, w3, b3, w4, b4, w5, b5) = prepped
    B, D = x.shape
    n_pad = w5.shape[1]

    if block_b is None:
        block_b = _choose_block_b(B)
    block_b = max(16, min(_round_up(block_b, 16), _round_up(B, 16), 1024))
    grid = (pl.cdiv(B, block_b),)

    # Weight/bias tiles are the full arrays with a constant index_map, so they
    # are DMA'd once and stay resident across grid steps (~1.3 MiB bf16 total).
    def full(arr):
        return pl.BlockSpec(arr.shape, lambda i, _nd=arr.ndim: (0,) * _nd)

    # NOTE: when B is not a multiple of block_b, the last x tile reads padding
    # rows whose contents are unspecified; this is safe because rows are fully
    # independent and Pallas drops the out-of-bounds output rows on writeback.
    out_padded = pl.pallas_call(
        ffnn_deep_kernel,
        out_shape=jax.ShapeDtypeStruct((B, n_pad), jnp.float32),
        grid_spec=pltpu.PrefetchScalarGridSpec(
            num_scalar_prefetch=0,
            grid=grid,
            in_specs=[
                pl.BlockSpec((block_b, D), lambda i: (i, 0)),
                full(w1), full(b1),
                full(w2), full(b2),
                full(w3), full(b3),
                full(w4), full(b4),
                full(w5), full(b5),
            ],
            out_specs=pl.BlockSpec((block_b, n_pad), lambda i: (i, 0)),
        ),
        compiler_params=pltpu.CompilerParams(
            dimension_semantics=("parallel",),
            vmem_limit_bytes=_pick_vmem_limit_bytes(),
        ),
    )(x, w1, b1, w2, b2, w3, b3, w4, b4, w5, b5)

    # Padded logit columns hold sigmoid(0)=0.5 garbage; strip them here. Never
    # hand out_padded to a caller directly.
    return out_padded[:, :n_classes]


def init_linear(key, in_dim, out_dim):
    """Deterministic PyTorch-style (uniform +-1/sqrt(in)) init, weight (in,out)."""
    kw, kb = jax.random.split(key)
    bound = 1.0 / jnp.sqrt(jnp.float32(in_dim))
    w = jax.random.uniform(kw, (in_dim, out_dim), jnp.float32, -bound, bound)
    b = jax.random.uniform(kb, (1, out_dim), jnp.float32, -bound, bound)
    return w, b


def reference_forward_f32(x, params):
    """Pure-f32 reference (matches the PyTorch module semantics in eval mode)."""
    (w1, b1, w2, b2, w3, b3, w4, b4, w5, b5) = params
    h = jnp.maximum(x @ w1 + b1, 0.0)
    h = jnp.maximum(h @ w2 + b2, 0.0)
    h = jnp.maximum(h @ w3 + b3, 0.0)
    h = jnp.maximum(h @ w4 + b4, 0.0)
    return jax.nn.sigmoid(h @ w5 + b5)


def reference_forward_matched(x, prepped, n_classes):
    """Reference with the same bf16-in / f32-acc / bf16-activation numerics."""
    (w1, b1, w2, b2, w3, b3, w4, b4, w5, b5) = prepped

    def lin(a, w, b):
        return jnp.dot(a, w, preferred_element_type=jnp.float32) + b

    h = x.astype(jnp.bfloat16)
    h = jnp.maximum(lin(h, w1, b1), 0.0).astype(jnp.bfloat16)
    h = jnp.maximum(lin(h, w2, b2), 0.0).astype(jnp.bfloat16)
    h = jnp.maximum(lin(h, w3, b3), 0.0).astype(jnp.bfloat16)
    h = jnp.maximum(lin(h, w4, b4), 0.0).astype(jnp.bfloat16)
    return jax.nn.sigmoid(lin(h, w5, b5))[:, :n_classes]


if __name__ == "__main__":
    # Module-default hidden sizes, modest shapes:
    # sbert_dim=384, hidden_1=512, hidden_2=256, n_classes=8, batch=256.
    batch, sbert_dim, h1, h2, n_classes = 256, 384, 512, 256, 8

    key = jax.random.PRNGKey(0)
    kx, k1, k2, k3, k4, k5 = jax.random.split(key, 6)

    x = jax.random.normal(kx, (batch, sbert_dim), jnp.float32)
    params = (*init_linear(k1, sbert_dim, h1),
              *init_linear(k2, h1, h1),
              *init_linear(k3, h1, h2),
              *init_linear(k4, h2, h2),
              *init_linear(k5, h2, n_classes))

    # One-time parameter prep (lane padding + dtype casts) out of the hot path.
    prepped, n_cls = prepare_params(params)

    out = ffnn_deep(x, prepped, n_cls)   # auto block_b -> 64 -> grid=(4,)
    out = jax.block_until_ready(out)
    assert out.shape == (batch, n_classes)

    # Tight check vs. a reference with identical bf16/f32-accumulate numerics.
    ref_matched = reference_forward_matched(x, prepped, n_cls)
    assert jnp.allclose(out, ref_matched, atol=1e-4, rtol=1e-4), \
        "mismatch vs bf16-matched reference"

    # Loose check vs. the full-f32 PyTorch-equivalent forward (bf16 rounding).
    ref_f32 = reference_forward_f32(x, params)
    assert jnp.allclose(out, ref_f32, atol=5e-2), "mismatch vs f32 reference"

    print("KERNEL_OK")
</pallas_src>

<mosaic_0001>
module attributes {stable_mosaic.version = 11 : i64} {
  func.func @ffnn_deep_kernel(%arg0: i32, %arg1: memref<64x384xf32, #tpu.memory_space<vmem>>, %arg2: memref<384x512xbf16, #tpu.memory_space<vmem>>, %arg3: memref<1x512xf32, #tpu.memory_space<vmem>>, %arg4: memref<512x512xbf16, #tpu.memory_space<vmem>>, %arg5: memref<1x512xf32, #tpu.memory_space<vmem>>, %arg6: memref<512x256xbf16, #tpu.memory_space<vmem>>, %arg7: memref<1x256xf32, #tpu.memory_space<vmem>>, %arg8: memref<256x256xbf16, #tpu.memory_space<vmem>>, %arg9: memref<1x256xf32, #tpu.memory_space<vmem>>, %arg10: memref<256x128xbf16, #tpu.memory_space<vmem>>, %arg11: memref<1x128xf32, #tpu.memory_space<vmem>>, %arg12: memref<64x128xf32, #tpu.memory_space<vmem>>) attributes {dimension_semantics = [#tpu.dimension_semantics<parallel>], iteration_bounds = array<i64: 4>, scalar_prefetch = 0 : i64, scratch_operands = 0 : i64, tpu.core_type = #tpu.core_type<tc>, window_params = [{transform_indices = @transform_0, window_bounds = array<i64: 64, 384>}, {pipeline_mode = #tpu.pipeline_mode<synchronous>, transform_indices = @transform_1, window_bounds = array<i64: 384, 512>}, {pipeline_mode = #tpu.pipeline_mode<synchronous>, transform_indices = @transform_2, window_bounds = array<i64: 1, 512>}, {pipeline_mode = #tpu.pipeline_mode<synchronous>, transform_indices = @transform_3, window_bounds = array<i64: 512, 512>}, {pipeline_mode = #tpu.pipeline_mode<synchronous>, transform_indices = @transform_4, window_bounds = array<i64: 1, 512>}, {pipeline_mode = #tpu.pipeline_mode<synchronous>, transform_indices = @transform_5, window_bounds = array<i64: 512, 256>}, {pipeline_mode = #tpu.pipeline_mode<synchronous>, transform_indices = @transform_6, window_bounds = array<i64: 1, 256>}, {pipeline_mode = #tpu.pipeline_mode<synchronous>, transform_indices = @transform_7, window_bounds = array<i64: 256, 256>}, {pipeline_mode = #tpu.pipeline_mode<synchronous>, transform_indices = @transform_8, window_bounds = array<i64: 1, 256>}, {pipeline_mode = #tpu.pipeline_mode<synchronous>, transform_indices = @transform_9, window_bounds = array<i64: 256, 128>}, {pipeline_mode = #tpu.pipeline_mode<synchronous>, transform_indices = @transform_10, window_bounds = array<i64: 1, 128>}, {transform_indices = @transform_11, window_bounds = array<i64: 64, 128>}]} {
    %c0 = arith.constant 0 : index
    %c0_0 = arith.constant 0 : index
    %0 = vector.load %arg1[%c0, %c0_0] : memref<64x384xf32, #tpu.memory_space<vmem>>, vector<64x384xf32>
    %1 = arith.truncf %0 : vector<64x384xf32> to vector<64x384xbf16>
    %c0_1 = arith.constant 0 : index
    %c0_2 = arith.constant 0 : index
    %2 = vector.load %arg2[%c0_1, %c0_2] : memref<384x512xbf16, #tpu.memory_space<vmem>>, vector<384x512xbf16>
    %cst = arith.constant dense<0.000000e+00> : vector<64x512xf32>
    %3 = tpu.matmul %1, %2, %cst {dimension_numbers = #tpu.dot_dimension_numbers<[1], [0], [0], [1], [0, 0, 1, 1], [], []>} : vector<64x384xbf16>, vector<384x512xbf16>, vector<64x512xf32> -> vector<64x512xf32>
    %c0_3 = arith.constant 0 : index
    %c0_4 = arith.constant 0 : index
    %4 = vector.load %arg3[%c0_3, %c0_4] : memref<1x512xf32, #tpu.memory_space<vmem>>, vector<1x512xf32>
    %5 = vector.broadcast %4 : vector<1x512xf32> to vector<64x512xf32>
    %6 = arith.addf %3, %5 : vector<64x512xf32>
    %cst_5 = arith.constant 0.000000e+00 : f32
    %7 = vector.broadcast %cst_5 : f32 to vector<64x512xf32>
    %8 = arith.maximumf %6, %7 : vector<64x512xf32>
    %9 = arith.truncf %8 : vector<64x512xf32> to vector<64x512xbf16>
    %c0_6 = arith.constant 0 : index
    %c0_7 = arith.constant 0 : index
    %10 = vector.load %arg4[%c0_6, %c0_7] : memref<512x512xbf16, #tpu.memory_space<vmem>>, vector<512x512xbf16>
    %cst_8 = arith.constant dense<0.000000e+00> : vector<64x512xf32>
    %11 = tpu.matmul %9, %10, %cst_8 {dimension_numbers = #tpu.dot_dimension_numbers<[1], [0], [0], [1], [0, 0, 1, 1], [], []>} : vector<64x512xbf16>, vector<512x512xbf16>, vector<64x512xf32> -> vector<64x512xf32>
    %c0_9 = arith.constant 0 : index
    %c0_10 = arith.constant 0 : index
    %12 = vector.load %arg5[%c0_9, %c0_10] : memref<1x512xf32, #tpu.memory_space<vmem>>, vector<1x512xf32>
    %13 = vector.broadcast %12 : vector<1x512xf32> to vector<64x512xf32>
    %14 = arith.addf %11, %13 : vector<64x512xf32>
    %cst_11 = arith.constant 0.000000e+00 : f32
    %15 = vector.broadcast %cst_11 : f32 to vector<64x512xf32>
    %16 = arith.maximumf %14, %15 : vector<64x512xf32>
    %17 = arith.truncf %16 : vector<64x512xf32> to vector<64x512xbf16>
    %c0_12 = arith.constant 0 : index
    %c0_13 = arith.constant 0 : index
    %18 = vector.load %arg6[%c0_12, %c0_13] : memref<512x256xbf16, #tpu.memory_space<vmem>>, vector<512x256xbf16>
    %cst_14 = arith.constant dense<0.000000e+00> : vector<64x256xf32>
    %19 = tpu.matmul %17, %18, %cst_14 {dimension_numbers = #tpu.dot_dimension_numbers<[1], [0], [0], [1], [0, 0, 1, 1], [], []>} : vector<64x512xbf16>, vector<512x256xbf16>, vector<64x256xf32> -> vector<64x256xf32>
    %c0_15 = arith.constant 0 : index
    %c0_16 = arith.constant 0 : index
    %20 = vector.load %arg7[%c0_15, %c0_16] : memref<1x256xf32, #tpu.memory_space<vmem>>, vector<1x256xf32>
    %21 = vector.broadcast %20 : vector<1x256xf32> to vector<64x256xf32>
    %22 = arith.addf %19, %21 : vector<64x256xf32>
    %cst_17 = arith.constant 0.000000e+00 : f32
    %23 = vector.broadcast %cst_17 : f32 to vector<64x256xf32>
    %24 = arith.maximumf %22, %23 : vector<64x256xf32>
    %25 = arith.truncf %24 : vector<64x256xf32> to vector<64x256xbf16>
    %c0_18 = arith.constant 0 : index
    %c0_19 = arith.constant 0 : index
    %26 = vector.load %arg8[%c0_18, %c0_19] : memref<256x256xbf16, #tpu.memory_space<vmem>>, vector<256x256xbf16>
    %cst_20 = arith.constant dense<0.000000e+00> : vector<64x256xf32>
    %27 = tpu.matmul %25, %26, %cst_20 {dimension_numbers = #tpu.dot_dimension_numbers<[1], [0], [0], [1], [0, 0, 1, 1], [], []>} : vector<64x256xbf16>, vector<256x256xbf16>, vector<64x256xf32> -> vector<64x256xf32>
    %c0_21 = arith.constant 0 : index
    %c0_22 = arith.constant 0 : index
    %28 = vector.load %arg9[%c0_21, %c0_22] : memref<1x256xf32, #tpu.memory_space<vmem>>, vector<1x256xf32>
    %29 = vector.broadcast %28 : vector<1x256xf32> to vector<64x256xf32>
    %30 = arith.addf %27, %29 : vector<64x256xf32>
    %cst_23 = arith.constant 0.000000e+00 : f32
    %31 = vector.broadcast %cst_23 : f32 to vector<64x256xf32>
    %32 = arith.maximumf %30, %31 : vector<64x256xf32>
    %33 = arith.truncf %32 : vector<64x256xf32> to vector<64x256xbf16>
    %c0_24 = arith.constant 0 : index
    %c0_25 = arith.constant 0 : index
    %34 = vector.load %arg10[%c0_24, %c0_25] : memref<256x128xbf16, #tpu.memory_space<vmem>>, vector<256x128xbf16>
    %cst_26 = arith.constant dense<0.000000e+00> : vector<64x128xf32>
    %35 = tpu.matmul %33, %34, %cst_26 {dimension_numbers = #tpu.dot_dimension_numbers<[1], [0], [0], [1], [0, 0, 1, 1], [], []>} : vector<64x256xbf16>, vector<256x128xbf16>, vector<64x128xf32> -> vector<64x128xf32>
    %c0_27 = arith.constant 0 : index
    %c0_28 = arith.constant 0 : index
    %36 = vector.load %arg11[%c0_27, %c0_28] : memref<1x128xf32, #tpu.memory_space<vmem>>, vector<1x128xf32>
    %37 = vector.broadcast %36 : vector<1x128xf32> to vector<64x128xf32>
    %38 = arith.addf %35, %37 : vector<64x128xf32>
    %39 = arith.negf %38 : vector<64x128xf32>
    %40 = math.exp %39 : vector<64x128xf32>
    %cst_29 = arith.constant 1.000000e+00 : f32
    %41 = vector.broadcast %cst_29 : f32 to vector<64x128xf32>
    %42 = arith.addf %41, %40 : vector<64x128xf32>
    %43 = arith.divf %41, %42 : vector<64x128xf32>
    %c0_30 = arith.constant 0 : index
    %c0_31 = arith.constant 0 : index
    %44 = vector.load %arg12[%c0_30, %c0_31] : memref<64x128xf32, #tpu.memory_space<vmem>>, vector<64x128xf32>
    tpu.vector_store %arg12[%c0_30, %c0_31], %43 {strides = array<i32>} : memref<64x128xf32, #tpu.memory_space<vmem>>, vector<64x128xf32>,
    return
  }
  func.func @transform_0(%arg0: i32) -> (i32, i32) {
    %c0_i32 = arith.constant 0 : i32
    %c0_i32_0 = arith.constant 0 : i32
    return %arg0, %c0_i32 : i32, i32
  }
  func.func @transform_1(%arg0: i32) -> (i32, i32) {
    %c0_i32 = arith.constant 0 : i32
    %c0_i32_0 = arith.constant 0 : i32
    %c0_i32_1 = arith.constant 0 : i32
    return %c0_i32, %c0_i32_0 : i32, i32
  }
  func.func @transform_2(%arg0: i32) -> (i32, i32) {
    %c0_i32 = arith.constant 0 : i32
    %c0_i32_0 = arith.constant 0 : i32
    %c0_i32_1 = arith.constant 0 : i32
    return %c0_i32, %c0_i32_0 : i32, i32
  }
  func.func @transform_3(%arg0: i32) -> (i32, i32) {
    %c0_i32 = arith.constant 0 : i32
    %c0_i32_0 = arith.constant 0 : i32
    %c0_i32_1 = arith.constant 0 : i32
    return %c0_i32, %c0_i32_0 : i32, i32
  }
  func.func @transform_4(%arg0: i32) -> (i32, i32) {
    %c0_i32 = arith.constant 0 : i32
    %c0_i32_0 = arith.constant 0 : i32
    %c0_i32_1 = arith.constant 0 : i32
    return %c0_i32, %c0_i32_0 : i32, i32
  }
  func.func @transform_5(%arg0: i32) -> (i32, i32) {
    %c0_i32 = arith.constant 0 : i32
    %c0_i32_0 = arith.constant 0 : i32
    %c0_i32_1 = arith.constant 0 : i32
    return %c0_i32, %c0_i32_0 : i32, i32
  }
  func.func @transform_6(%arg0: i32) -> (i32, i32) {
    %c0_i32 = arith.constant 0 : i32
    %c0_i32_0 = arith.constant 0 : i32
    %c0_i32_1 = arith.constant 0 : i32
    return %c0_i32, %c0_i32_0 : i32, i32
  }
  func.func @transform_7(%arg0: i32) -> (i32, i32) {
    %c0_i32 = arith.constant 0 : i32
    %c0_i32_0 = arith.constant 0 : i32
    %c0_i32_1 = arith.constant 0 : i32
    return %c0_i32, %c0_i32_0 : i32, i32
  }
  func.func @transform_8(%arg0: i32) -> (i32, i32) {
    %c0_i32 = arith.constant 0 : i32
    %c0_i32_0 = arith.constant 0 : i32
    %c0_i32_1 = arith.constant 0 : i32
    return %c0_i32, %c0_i32_0 : i32, i32
  }
  func.func @transform_9(%arg0: i32) -> (i32, i32) {
    %c0_i32 = arith.constant 0 : i32
    %c0_i32_0 = arith.constant 0 : i32
    %c0_i32_1 = arith.constant 0 : i32
    return %c0_i32, %c0_i32_0 : i32, i32
  }
  func.func @transform_10(%arg0: i32) -> (i32, i32) {
    %c0_i32 = arith.constant 0 : i32
    %c0_i32_0 = arith.constant 0 : i32
    %c0_i32_1 = arith.constant 0 : i32
    return %c0_i32, %c0_i32_0 : i32, i32
  }
  func.func @transform_11(%arg0: i32) -> (i32, i32) {
    %c0_i32 = arith.constant 0 : i32
    %c0_i32_0 = arith.constant 0 : i32
    return %arg0, %c0_i32 : i32, i32
  }
}

</mosaic_0001>

<bundles_post_ra>
// kernel: ffnn_deep.1
= control target key start
LH: loop header
LB: loop body
LE: loop exit
PB: predicated region body
PF: predicated region fallthrough
CT: control target
= control target key end

     0   :  { %s5690_s0 = inlined_call_operand.hbm [shape: f32[256,384], index: 0, kind: input, shape index: {}]   ;;  %s5691_s1 = inlined_call_operand.hbm [shape: bf16[384,512], index: 1, kind: input, shape index: {}]   ;;  %s5692_s2 = inlined_call_operand.hbm [shape: f32[1,512], index: 2, kind: input, shape index: {}]   ;;  %s5693_s3 = inlined_call_operand.hbm [shape: bf16[512,512], index: 3, kind: input, shape index: {}]   ;;  %s5694_s4 = inlined_call_operand.vmem [shape: f32[1,512], index: 4, kind: input, shape index: {}]   ;;  %s5695_s5 = inlined_call_operand.hbm [shape: bf16[512,256], index: 5, kind: input, shape index: {}]   ;;  %s5696_s6 = inlined_call_operand.vmem [shape: f32[1,256], index: 6, kind: input, shape index: {}]   ;;  %s5697_s7 = inlined_call_operand.hbm [shape: bf16[256,256], index: 7, kind: input, shape index: {}]   ;;  %s5698_s8 = inlined_call_operand.vmem [shape: f32[1,256], index: 8, kind: input, shape index: {}]   ;;  %s5699_s9 = inlined_call_operand.hbm [shape: bf16[256,128], index: 9, kind: input, shape index: {}]   ;;  %s5700_s10 = inlined_call_operand.vmem [shape: f32[1,128], index: 10, kind: input, shape index: {}]   ;;  %s5701_s11 = inlined_call_operand.vmem [shape: f32[256,128], index: 11, kind: output, shape index: {}]  }
   0x1   :  { %5707 = sst [smem:[#allocation17_spill]] %s5691_s1 }
   0x2   :  { %5708 = sst [smem:[#allocation18_spill]] %s5692_s2 }
   0x3   :  { %16 = vsyncpa [#allocation3], 0 }
   0x4   :  { %18 = vsyncpa [#allocation3 + $0x1], 0 }
   0x5   :  { %19 = vsyncpa [#allocation5], 0 }
   0x6   :  { %20 = vsyncpa [#allocation8], 0 }
   0x7   :  { %21 = vsyncpa [#allocation11], 0  ;;  %s5204_s17 = smov 0   ;;  %s5206_s18 = smov 0  }
   0x8   :  { %s5208_s19 = smov 0   ;;  %s5210_s20 = smov 0  }
   0x9 LB: > { %s5128_s21 = smov [#allocation4]   ;;  %s5705_s23 = sadd.s32 4294967295, %s5126_s20   ;;  %s5126_s20 = sphi %s5210_s20, %s5725_s20   ;;  %s5122_s19 = sphi %s5208_s19, %s5724_s19   ;;  %s5118_s18 = sphi %s5206_s18, %s5723_s18   ;;  %s5114_s17 = sphi %s5204_s17, %s5722_s17  }
   0xa   : > { %s306_s22 = sshll.u32 %s5128_s21, 4  ;;  %p3849_p0 = scmp.ge.s32.totalorder %s5126_s20, 1  ;;  %s307_s22 = int_to_ptr.vmem [resolvable:$true] %s306_s22 }
   0xb   : > { %p5228_p1 = scmp.eq.s32.totalorder %s5705_s23, 0  ;;  %p294_p2 = scmp.lt.s32.totalorder %s5126_s20, 5 }
   0xc   : > { %s5129_s26 = smov [#allocation7]   ;;  %s5130_s29 = smov [#allocation10]  }
   0xd   : > { %s5709_s24 = scalar_select %p5228_p1, 1, 0 }
   0xe   : > { %p5233_p3 = pnand %p3849_p0, %p294_p2  ;;  %s330_s27 = sshll.u32 %s5129_s26, 4  ;;  %s331_s27 = int_to_ptr.vmem [resolvable:$true] %s330_s27 }
   0xf   : > { %s362_s30 = sshll.u32 %s5130_s29, 4  ;;  %s4907_s13 = scalar_lea.vmem %s307_s22, 12288  ;;  %s363_s30 = int_to_ptr.vmem [resolvable:$true] %s362_s30 }
  0x10   : > { %s5710_s25 = scalar_select %p5233_p3, 1, 0 }
  0x11   : > { %p4285_p4 = pneg %p5233_p3  ;;  %p4908_p7 = scmp.ne.s32.totalorder %s307_s22, %s4907_s13 }
  0x12   : > { %p4915_p10 = scmp.lt.s32.totalorder %s307_s22, %s307_s22  ;;  %p4916_p11 = scmp.lt.s32.totalorder %s4907_s13, %s4907_s13 }
  0x13   : > { %p5241_p5 = pnand %p4285_p4, %p5228_p1 }
  0x14   : > { %p4917_p12 = por %p4916_p11, %p4915_p10 }
  0x15   : > { %p5247_p6 = pneg %p5241_p5 }
  0x17   : > { %p4910_p8 = pnand %p4908_p7, %p5247_p6 }
  0x19   : > { %p4911_p9 = pneg %p4910_p8 }
  0x1b   : > { %p4918_p13 = pnand %p4917_p12, %p4911_p9 }
  0x1d   : > { %4921 = shalt.err (!%p4918_p13)
}
  0x1e   : > { %s5131_s14 = smov 256   ;;  %s5132_s15 = smov 16  }
  0x1f   : > { %s5713_s1 = sld [smem:[#allocation17_spill]]  ;;  %s4933_s26 = scalar_lea.vmem %s331_s27, 16384 }
  0x20   : > { %p4934_p0 = scmp.ne.s32.totalorder %s331_s27, %s4933_s26  ;;  %p4941_p7 = scmp.lt.s32.totalorder %s331_s27, %s331_s27 }
  0x21   : > { %p4942_p8 = scmp.lt.s32.totalorder %s4933_s26, %s4933_s26 }
  0x22   : > { %p4936_p2 = pnand %p4934_p0, %p5247_p6 }
  0x23   : > { %p4943_p3 = por %p4942_p8, %p4941_p7 }
  0x24   : > { %p4937_p4 = pneg %p4936_p2 }
  0x25   : > { %4288 = dma.hbm_to_vmem [thread:$0]  (!%p5241_p5), %s5713_s1, 12288, %s307_s22, [#allocation5], %s5131_s14, %s5131_s14, %s5132_s15  }
  0x26   : > { %p4944_p10 = pnand %p4943_p3, %p4937_p4 }
  0x28   : > { %4947 = shalt.err (!%p4944_p10)
}
  0x29   : > { %4294 = dma.hbm_to_vmem [thread:$0]  (!%p5241_p5), %s5693_s3, 16384, %s331_s27, [#allocation8], %s5131_s14, %s5131_s14, %s5132_s15  }
  0x2a   : > { %s4959_s16 = scalar_lea.vmem %s363_s30, 4096  ;;  %p4967_p13 = scmp.lt.s32.totalorder %s363_s30, %s363_s30 }
  0x2b   : > { %p4960_p9 = scmp.ne.s32.totalorder %s363_s30, %s4959_s16  ;;  %p4968_p0 = scmp.lt.s32.totalorder %s4959_s16, %s4959_s16 }
  0x2d   : > { %p4962_p11 = pnand %p4960_p9, %p5247_p6  ;;  %p4969_p2 = por %p4968_p0, %p4967_p13 }
  0x2f   : > { %p4963_p12 = pneg %p4962_p11 }
  0x31   : > { %p4970_p1 = pnand %p4969_p2, %p4963_p12 }
  0x33   : > { %4973 = shalt.err (!%p4970_p1)
}
  0x34   : > { %s5133_s22 = smov 128   ;;  %s5134_s21 = smov 8  }
  0x35   : > { %4300 = dma.hbm_to_vmem [thread:$0]  (!%p5241_p5), %s5697_s7, 4096, %s363_s30, [#allocation11], %s5133_s22, %s5133_s22, %s5134_s21  }
  0x36   : > { %s5135_s15 = smov [#allocation6]   ;;  %s5136_s29 = smov [#allocation9]  }
  0x37   : > { %s320_s26 = sshll.u32 %s5135_s15, 4  ;;  %s346_s13 = sshll.u32 %s5136_s29, 4  ;;  %s321_s26 = int_to_ptr.vmem [resolvable:$true] %s320_s26  ;;  %s347_s13 = int_to_ptr.vmem [resolvable:$true] %s346_s13 }
  0x38   : > { %s4985_s16 = scalar_lea.vmem %s321_s26, 64  ;;  %p4993_p7 = scmp.lt.s32.totalorder %s321_s26, %s321_s26 }
  0x39   : > { %p4986_p3 = scmp.ne.s32.totalorder %s321_s26, %s4985_s16  ;;  %p4994_p8 = scmp.lt.s32.totalorder %s4985_s16, %s4985_s16 }
  0x3b   : > { %p4988_p1 = pnand %p4986_p3, %p5247_p6  ;;  %p4995_p10 = por %p4994_p8, %p4993_p7 }
  0x3d   : > { %p4989_p4 = pneg %p4988_p1 }
  0x3f   : > { %p4996_p9 = pnand %p4995_p10, %p4989_p4 }
  0x41   : > { %4999 = shalt.err (!%p4996_p9)
}
  0x42   : > { %s5714_s2 = sld [smem:[#allocation18_spill]]  ;;  %s5011_s30 = scalar_lea.vmem %s347_s13, 8192 }
  0x43   : > { %p5012_p11 = scmp.ne.s32.totalorder %s347_s13, %s5011_s30  ;;  %p5019_p0 = scmp.lt.s32.totalorder %s347_s13, %s347_s13 }
  0x44   : > { %p5020_p2 = scmp.lt.s32.totalorder %s5011_s30, %s5011_s30 }
  0x45   : > { %p5014_p12 = pnand %p5012_p11, %p5247_p6 }
  0x46   : > { %p5021_p3 = por %p5020_p2, %p5019_p0 }
  0x47   : > { %p5015_p13 = pneg %p5014_p12 }
  0x48   : > { %4291 = dma.hbm_to_vmem [thread:$0]  (!%p5241_p5), %s5714_s2, 64, %s321_s26, [#allocation5]  }
  0x49   : > { %p5022_p1 = pnand %p5021_p3, %p5015_p13 }
  0x4b   : > { %5025 = shalt.err (!%p5022_p1)
}
  0x4c   : > { %4297 = dma.hbm_to_vmem [thread:$0]  (!%p5241_p5), %s5695_s5, 8192, %s347_s13, [#allocation8], %s5133_s22, %s5133_s22, %s5134_s21  }
  0x4d   : > { %s5137_s15 = smov [#allocation12]  }
  0x4e   : > { %s378_s26 = sshll.u32 %s5137_s15, 4  ;;  %s379_s26 = int_to_ptr.vmem [resolvable:$true] %s378_s26 }
  0x4f   : > { %s5037_s29 = scalar_lea.vmem %s379_s26, 2048  ;;  %p5045_p10 = scmp.lt.s32.totalorder %s379_s26, %s379_s26 }
  0x50   : > { %p5038_p4 = scmp.ne.s32.totalorder %s379_s26, %s5037_s29  ;;  %p5046_p9 = scmp.lt.s32.totalorder %s5037_s29, %s5037_s29 }
  0x52   : > { %p5040_p7 = pnand %p5038_p4, %p5247_p6  ;;  %p5047_p11 = por %p5046_p9, %p5045_p10 }
  0x54   : > { %p5041_p8 = pneg %p5040_p7 }
  0x56   : > { %p5048_p12 = pnand %p5047_p11, %p5041_p8 }
  0x58   : > { %5051 = shalt.err (!%p5048_p12)
}
  0x59   : > { %s5138_s16 = smov 64   ;;  %s5139_s12 = smov 4  }
  0x5a   : > { %4303 = dma.hbm_to_vmem [thread:$0]  (!%p5241_p5), %s5699_s9, 2048, %s379_s26, [#allocation11], %s5138_s16, %s5138_s16, %s5139_s12  }
  0x5b   : > { %s5300_s13 = sadd.s32 1, %s5126_s20   ;;  %s34_s27 = sadd.s32 1, %s5122_s19 }
  0x5c   : > { %s31_s30 = ssub.s32 %s5126_s20, %s5300_s13  ;;  %p41_p6 = scmp.ne.s32.totalorder %s5122_s19, %s5118_s18 }
  0x5d   : > { %p32_p13 = scmp.eq.s32.totalorder %s31_s30, 0  ;;  %p42_p0 = scmp.eq.s32.totalorder %s5126_s20, 0 }
  0x5e   : > { %p47_p2 = scmp.ne.s32.totalorder %s5118_s18, %s5114_s17  ;;  %p4314_p3 = scmp.lt.s32.totalorder %s5126_s20, 4 }
  0x5f   : > { %s5312_s14 = scalar_select %p32_p13, %s5122_s19, %s34_s27  }
  0x60   : > { %p43_p1 = por %p42_p0, %p41_p6  ;;  %p5715_p4 = scmp.ne.s32.totalorder %s5709_s24, 0 }
  0x61   : > { %s395_s23 = sand.u32 1, %s5122_s19   ;;  %s4257_s15 = smul.u32 3072, %s5126_s20 }
  0x62   : > { %p5316_p7 = por %p5715_p4, %p47_p2  ;;  %s4256_s26 = smul.u32 192, %s395_s23 }
  0x63   : > { %s5325_s12 = scalar_lea.hbm %s5690_s0, %s4257_s15  ;;  %p5327_p5 = pnand %p4314_p3, %p43_p1 }
  0x64   : > { %s5716_s28 = scalar_select %p5316_p7, 1, 0 }
  0x65   : > { %s399_s22 = scalar_lea.vmem [#allocation2], %s4256_s26  ;;  %s5333_s27 = scalar_lea.sflag [#allocation3], %s395_s23 }
  0x66   : > { %s407_s21 = sshll.u32 %s399_s22, 4  ;;  %s5052_s30 = scalar_lea.hbm %s5325_s12, 3072  ;;  %s5331_s21 = int_to_ptr.vmem [resolvable:$true] %s407_s21 }
  0x67   : > { %p5053_p8 = scmp.ne.s32.totalorder %s5325_s12, %s5052_s30  ;;  %p5054_p10 = pneg %p5327_p5 }
  0x68   : > { %s5057_s16 = scalar_lea.hbm %s5690_s0, 12288  ;;  %p5058_p12 = scmp.lt.s32.totalorder %s5325_s12, %s5690_s0 }
  0x69   : > { %p5055_p9 = pnand %p5054_p10, %p5053_p8  ;;  %p5059_p6 = scmp.lt.s32.totalorder %s5057_s16, %s5052_s30 }
  0x6b   : > { %p5056_p11 = pneg %p5055_p9  ;;  %p5060_p13 = por %p5059_p6, %p5058_p12 }
  0x6d   : > { %p5061_p0 = pnand %p5060_p13, %p5056_p11 }
  0x6f   : > { %5064 = shalt.err (!%p5061_p0)
}
  0x70   : > { %s5065_s23 = scalar_lea.vmem %s5331_s21, 3072  ;;  %s5140_s26 = smov [#allocation2]  }
  0x71   : > { %p5066_p2 = scmp.ne.s32.totalorder %s5331_s21, %s5065_s23  ;;  %s5070_s22 = sshll.u32 %s5140_s26, 4  ;;  %s5071_s22 = int_to_ptr.vmem [resolvable:$false] %s5070_s22 }
  0x72   : > { %s5072_s15 = scalar_lea.vmem %s5071_s22, 6144  ;;  %p5073_p4 = scmp.lt.s32.totalorder %s5331_s21, %s5071_s22 }
  0x73   : > { %p5068_p3 = pnand %p5066_p2, %p5054_p10  ;;  %p5074_p8 = scmp.lt.s32.totalorder %s5072_s15, %s5065_s23 }
  0x75   : > { %p5069_p1 = pneg %p5068_p3  ;;  %p5075_p9 = por %p5074_p8, %p5073_p4 }
  0x77   : > { %p5076_p7 = pnand %p5075_p9, %p5069_p1 }
  0x79   : > { %5079 = shalt.err (!%p5076_p7)
}
  0x7a   : > { %s5141_s1 = smov 384   ;;  %s5142_s2 = smov 24  }
  0x7b   : > { %4307 = dma.hbm_to_vmem [thread:$0]  (!%p5327_p5), %s5325_s12, 3072, %s5331_s21, %s5333_s27, %s5141_s1, %s5141_s1, %s5142_s2  }
  0x7c   : > { %p5718_p10 = scmp.ne.s32.totalorder %s5710_s25, 0 }
  0x7d   : > { %s421_s30 = sand.u32 (!%p5718_p10), 1, %s5118_s18   ;;  %p5719_p11 = scmp.ne.s32.totalorder (!%p5718_p10), %s5716_s28, 0 }
  0x7e   : > { %419 = sbr.rel (%p5718_p10) target bundleno = 1388 (0x56c), region = 64  ;;  %s422_s16 = scalar_lea.sflag (!%p5718_p10), [#allocation3], %s421_s30 }
  0x7f   : > { %s4258_s29 = smul.u32 (!%p5718_p10), 192, %s421_s30 }
  0x81   : > { %s5357_s23 = scalar_lea.vmem (!%p5718_p10), [#allocation2], %s4258_s29 }
  0x83   : > { %5097 = dma.done.wait (%p5719_p11), %s422_s16, 3072  }
  0x84   : > { %5099 = vsyncadd (%p5719_p11), %s422_s16, 4294964224  ;;  %p5720_p7 = scmp.ne.s32.totalorder %s5709_s24, 0 }
  0x86   : > { %5101 = dma.done.wait (%p5720_p7), [#allocation5], 12352  }
  0x87   : > { %5103 = vsyncadd (%p5720_p7), [#allocation5], 4294954944 }
  0x88   : > { %5105 = dma.done.wait (%p5720_p7), [#allocation8], 24576  }
  0x89   : > { %5107 = vsyncadd (%p5720_p7), [#allocation8], 4294942720 }
  0x8a   : > { %5109 = dma.done.wait (%p5720_p7), [#allocation11], 6144  }
  0x8b   : > { %5111 = vsyncadd (%p5720_p7), [#allocation11], 4294961152  ;;  %v5143_v0 = vmov 0   ;;  %v4368_v1 = vld [vmem:[#allocation4 + $0xe4] ss:$16 sps:$4 sm:$0xff]   ;;  %v501_v34 = vld [vmem:[%s5357_s23 + $0x28] sm:$0xff] }
  0x8c   : > { %1235 = vmatprep.mubr.bf16.mxu1 %v5143_v0  ;;  %v4370_v2 = vld [vmem:[#allocation4 + $0x2e4] ss:$16 sps:$4 sm:$0xff]   ;;  %1130 = vmatprep.subr.bf16.mxu0 %v4368_v1  ;;  %v4372_v3 = vld [vmem:[#allocation4 + $0xe0] ss:$16 sps:$4 sm:$0xff]   ;;  %v4420_v36 = vld [vmem:[#allocation4 + $0xec] ss:$16 sps:$4 sm:$0xff]  }
  0x8d   : > { %v4373_v4 = vld [vmem:[#allocation4 + $0x2e0] ss:$16 sps:$4 sm:$0xff]   ;;  %1203 = vmatprep.subr.bf16.mxu1 %v4370_v2  ;;  %v4374_v5 = vld [vmem:[#allocation4 + $0xc4] ss:$16 sps:$4 sm:$0xff]   ;;  %1131 = vmatpush1.bf16.msra.mxu0 %v4372_v3  ;;  %v4418_v38 = vld [vmem:[#allocation4 + $0xe8] ss:$16 sps:$4 sm:$0xff]  }
  0x8e   : > { %1204 = vmatpush1.bf16.msra.mxu1 %v4373_v4  ;;  %v4376_v6 = vld [vmem:[#allocation4 + $0x2c4] ss:$16 sps:$4 sm:$0xff]   ;;  %v4378_v7 = vld [vmem:[#allocation4 + $0xc0] ss:$16 sps:$4 sm:$0xff]   ;;  %1132 = vmatprep.subr.bf16.mxu0 %v4374_v5  ;;  %v4426_v41 = vld [vmem:[#allocation4 + $0xcc] ss:$16 sps:$4 sm:$0xff]  }
  0x8f   : > { %v4379_v8 = vld [vmem:[#allocation4 + $0x2c0] ss:$16 sps:$4 sm:$0xff]   ;;  %1205 = vmatprep.subr.bf16.mxu1 %v4376_v6  ;;  %v4380_v9 = vld [vmem:[#allocation4 + $0xa4] ss:$16 sps:$4 sm:$0xff]   ;;  %v4424_v42 = vld [vmem:[#allocation4 + $0xc8] ss:$16 sps:$4 sm:$0xff]  }
  0x90   : > { %v4382_v10 = vld [vmem:[#allocation4 + $0x2a4] ss:$16 sps:$4 sm:$0xff]   ;;  %v4384_v11 = vld [vmem:[#allocation4 + $0xa0] ss:$16 sps:$4 sm:$0xff]   ;;  %v4432_v45 = vld [vmem:[#allocation4 + $0xac] ss:$16 sps:$4 sm:$0xff]  }
  0x91   : > { %v4385_v12 = vld [vmem:[#allocation4 + $0x2a0] ss:$16 sps:$4 sm:$0xff]   ;;  %1133 = vmatpush1.bf16.msra.mxu0 %v4378_v7  ;;  %v4386_v13 = vld [vmem:[#allocation4 + $0x84] ss:$16 sps:$4 sm:$0xff]   ;;  %v4430_v46 = vld [vmem:[#allocation4 + $0xa8] ss:$16 sps:$4 sm:$0xff]  }
  0x92   : > { %1206 = vmatpush1.bf16.msra.mxu1 %v4379_v8  ;;  %1134 = vmatprep.subr.bf16.mxu0 %v4380_v9  ;;  %v4388_v14 = vld [vmem:[#allocation4 + $0x284] ss:$16 sps:$4 sm:$0xff]   ;;  %v4390_v15 = vld [vmem:[#allocation4 + $0x80] ss:$16 sps:$4 sm:$0xff]   ;;  %v4438_v49 = vld [vmem:[#allocation4 + $0x8c] ss:$16 sps:$4 sm:$0xff]  }
  0x93   : > { %1207 = vmatprep.subr.bf16.mxu1 %v4382_v10  ;;  %v4391_v16 = vld [vmem:[#allocation4 + $0x280] ss:$16 sps:$4 sm:$0xff]   ;;  %v4392_v17 = vld [vmem:[#allocation4 + $0x64] ss:$16 sps:$4 sm:$0xff]   ;;  %v497_v50 = vld [vmem:[%s5357_s23 + $0x8] sm:$0xff]  ;;  %s5721_s22 = sadd.s32 4294967295, %s5126_s20  }
  0x94   : > { %v4394_v18 = vld [vmem:[#allocation4 + $0x264] ss:$16 sps:$4 sm:$0xff]   ;;  %v4396_v19 = vld [vmem:[#allocation4 + $0x60] ss:$16 sps:$4 sm:$0xff]   ;;  %v4436_v52 = vld [vmem:[#allocation4 + $0x88] ss:$16 sps:$4 sm:$0xff]  }
  0x95   : > { %1135 = vmatpush1.bf16.msra.mxu0 %v4384_v11  ;;  %v4397_v20 = vld [vmem:[#allocation4 + $0x260] ss:$16 sps:$4 sm:$0xff]   ;;  %v4398_v21 = vld [vmem:[#allocation4 + $0x44] ss:$16 sps:$4 sm:$0xff]   ;;  %v4444_v56 = vld [vmem:[#allocation4 + $0x6c] ss:$16 sps:$4 sm:$0xff]  }
  0x96   : > { %1208 = vmatpush1.bf16.msra.mxu1 %v4385_v12  ;;  %1136 = vmatprep.subr.bf16.mxu0 %v4386_v13  ;;  %v4400_v22 = vld [vmem:[#allocation4 + $0x244] ss:$16 sps:$4 sm:$0xff]   ;;  %v4402_v23 = vld [vmem:[#allocation4 + $0x40] ss:$16 sps:$4 sm:$0xff]   ;;  %v4442_v57 = vld [vmem:[#allocation4 + $0x68] ss:$16 sps:$4 sm:$0xff]  }
  0x97   : > { %1209 = vmatprep.subr.bf16.mxu1 %v4388_v14  ;;  %v4403_v24 = vld [vmem:[#allocation4 + $0x240] ss:$16 sps:$4 sm:$0xff]   ;;  %v4404_v25 = vld [vmem:[#allocation4 + $0x24] ss:$16 sps:$4 sm:$0xff]   ;;  %v507_v60 = vld [vmem:[%s5357_s23 + $0x58] sm:$0xff]  ;;  %s3867_s15 = sshll.u32 %s5721_s22, 3 }
  0x98   : > { %v4406_v26 = vld [vmem:[#allocation4 + $0x224] ss:$16 sps:$4 sm:$0xff]   ;;  %v4408_v27 = vld [vmem:[#allocation4 + $0x20] ss:$16 sps:$4 sm:$0xff]   ;;  %v4450_v63 = vld [vmem:[#allocation4 + $0x4c] ss:$16 sps:$4 sm:$0xff]  }
  0x99   : > { %1137 = vmatpush1.bf16.msra.mxu0 %v4390_v15  ;;  %v4409_v28 = vld [vmem:[#allocation4 + $0x220] ss:$16 sps:$4 sm:$0xff]   ;;  %v4410_v29 = vld [vmem:[#allocation4 + $0x4] ss:$16 sps:$4 sm:$0xff]   ;;  %v4448_v1 = vld [vmem:[#allocation4 + $0x48] ss:$16 sps:$4 sm:$0xff]  }
  0x9a   : > { %1210 = vmatpush1.bf16.msra.mxu1 %v4391_v16  ;;  %1138 = vmatprep.subr.bf16.mxu0 %v4392_v17  ;;  %v4412_v30 = vld [vmem:[#allocation4 + $0x204] ss:$16 sps:$4 sm:$0xff]   ;;  %v4414_v31 = vld [vmem:[#allocation4] ss:$16 sps:$4 sm:$0xff]   ;;  %v4456_v4 = vld [vmem:[#allocation4 + $0x2c] ss:$16 sps:$4 sm:$0xff]  }
  0x9b   : > { %1211 = vmatprep.subr.bf16.mxu1 %v4394_v18  ;;  %v4415_v32 = vld [vmem:[#allocation4 + $0x200] ss:$16 sps:$4 sm:$0xff]   ;;  %v4416_v35 = vld [vmem:[#allocation4 + $0x1e4] ss:$16 sps:$4 sm:$0xff]   ;;  %v513_v6 = vld [vmem:[%s5357_s23 + $0x88] sm:$0xff]  ;;  %p490_p5 = scmp.lt.s32.totalorder %s3867_s15, 31 }
  0x9c   : > { %v498_v33 = vld [vmem:[%s5357_s23 + $0x10] sm:$0xff]  ;;  %v500_v51 = vld [vmem:[%s5357_s23 + $0x20] sm:$0xff]  ;;  %v4454_v7 = vld [vmem:[#allocation4 + $0x28] ss:$16 sps:$4 sm:$0xff]  }
  0x9d   : > { %1139 = vmatpush1.bf16.msra.mxu0 %v4396_v19  ;;  %v5378_v37 = vpack.c.bf16 %v501_v34, %v498_v33  ;;  %v4421_v39 = vld [vmem:[#allocation4 + $0x1e0] ss:$16 sps:$4 sm:$0xff]   ;;  %v4422_v40 = vld [vmem:[#allocation4 + $0x1c4] ss:$16 sps:$4 sm:$0xff]   ;;  %v5384_v54 = vpack.c.bf16 %v500_v51, %v497_v50  ;;  %v4462_v11 = vld [vmem:[#allocation4 + $0xc] ss:$16 sps:$4 sm:$0xff]  }
  0x9e   : > { %1212 = vmatpush1.bf16.msra.mxu1 %v4397_v20  ;;  %1140 = vmatprep.subr.bf16.mxu0 %v4398_v21  ;;  %v4427_v43 = vld [vmem:[#allocation4 + $0x1c0] ss:$16 sps:$4 sm:$0xff]   ;;  %v4428_v44 = vld [vmem:[#allocation4 + $0x1a4] ss:$16 sps:$4 sm:$0xff]   ;;  %v4460_v12 = vld [vmem:[#allocation4 + $0x8] ss:$16 sps:$4 sm:$0xff]  }
  0x9f   : > { %1213 = vmatprep.subr.bf16.mxu1 %v4400_v22  ;;  %v4433_v47 = vld [vmem:[#allocation4 + $0x1a0] ss:$16 sps:$4 sm:$0xff]   ;;  %v4434_v48 = vld [vmem:[#allocation4 + $0x184] ss:$16 sps:$4 sm:$0xff]   ;;  %1162 = vmatprep.mubr.bf16.mxu0 %v5384_v54  ;;  %v499_v15 = vld [vmem:[%s5357_s23 + $0x18] sm:$0xff]  ;;  %s5727_s15 = smov (!%p490_p5, %s3867_s15), 31 }
  0xa0   : > { %v4439_v53 = vld [vmem:[#allocation4 + $0x180] ss:$16 sps:$4 sm:$0xff]   ;;  %v4440_v55 = vld [vmem:[#allocation4 + $0x164] ss:$16 sps:$4 sm:$0xff]   ;;  %v4466_v16 = vld [vmem:[#allocation4 + $0x1ec] ss:$16 sps:$4 sm:$0xff]  }
  0xa1   : > { %1141 = vmatpush1.bf16.msra.mxu0 %v4402_v23  ;;  %v4445_v58 = vld [vmem:[#allocation4 + $0x160] ss:$16 sps:$4 sm:$0xff]   ;;  %v4446_v61 = vld [vmem:[#allocation4 + $0x144] ss:$16 sps:$4 sm:$0xff]   ;;  %v4469_v17 = vld [vmem:[#allocation4 + $0x2ec] ss:$16 sps:$4 sm:$0xff]  }
  0xa2   : > { %1214 = vmatpush1.bf16.msra.mxu1 %v4403_v24  ;;  %1142 = vmatprep.subr.bf16.mxu0 %v4404_v25  ;;  %v504_v59 = vld [vmem:[%s5357_s23 + $0x40] sm:$0xff]  ;;  %v510_v5 = vld [vmem:[%s5357_s23 + $0x70] sm:$0xff]  ;;  %v4464_v18 = vld [vmem:[#allocation4 + $0x1e8] ss:$16 sps:$4 sm:$0xff]   ;;  %s3868_s20 = sshll.u32 %s5727_s15, 3 }
  0xa3   : > { %1215 = vmatprep.subr.bf16.mxu1 %v4406_v26  ;;  %v5389_v62 = vpack.c.bf16 %v507_v60, %v504_v59  ;;  %v4451_v2 = vld [vmem:[#allocation4 + $0x140] ss:$16 sps:$4 sm:$0xff]   ;;  %v4452_v3 = vld [vmem:[#allocation4 + $0x124] ss:$16 sps:$4 sm:$0xff]   ;;  %v5395_v9 = vpack.c.bf16 %v513_v6, %v510_v5  ;;  %v519_v20 = vld [vmem:[%s5357_s23 + $0xb8] sm:$0xff]  ;;  %s493_s30 = scalar_lea.vmem %s5701_s11, %s3868_s20 }
  0xa4   : > { %v4457_v8 = vld [vmem:[#allocation4 + $0x120] ss:$16 sps:$4 sm:$0xff]   ;;  %v4458_v10 = vld [vmem:[#allocation4 + $0x104] ss:$16 sps:$4 sm:$0xff]   ;;  %v503_v22 = vld [vmem:[%s5357_s23 + $0x38] sm:$0xff] }
  0xa5   : > { %1143 = vmatpush1.bf16.msra.mxu0 %v4408_v27  ;;  %v4463_v13 = vld [vmem:[#allocation4 + $0x100] ss:$16 sps:$4 sm:$0xff]   ;;  %v4467_v25 = vld [vmem:[#allocation4 + $0x2e8] ss:$16 sps:$4 sm:$0xff]   ;;  %v4472_v26 = vld [vmem:[#allocation4 + $0x1cc] ss:$16 sps:$4 sm:$0xff]  }
  0xa6   : > { %1216 = vmatpush1.bf16.msra.mxu1 %v4409_v28  ;;  %1144 = vmatprep.subr.bf16.mxu0 %v4410_v29  ;;  %v496_v14 = vld [vmem:[%s5357_s23] sm:$0xff]  ;;  %v506_v23 = vld [vmem:[%s5357_s23 + $0x50] sm:$0xff]  ;;  %v4475_v27 = vld [vmem:[#allocation4 + $0x2cc] ss:$16 sps:$4 sm:$0xff]  }
  0xa7   : > { %1217 = vmatprep.subr.bf16.mxu1 %v4412_v30  ;;  %v516_v19 = vld [vmem:[%s5357_s23 + $0xa0] sm:$0xff]  ;;  %v5403_v21 = vpack.c.bf16 %v499_v15, %v496_v14  ;;  %v4470_v28 = vld [vmem:[#allocation4 + $0x1c8] ss:$16 sps:$4 sm:$0xff]   ;;  %v5409_v30 = vpack.c.bf16 %v506_v23, %v503_v22  ;;  %v4478_v33 = vld [vmem:[#allocation4 + $0x1ac] ss:$16 sps:$4 sm:$0xff]  }
  0xa8   : > { %v5407_v24 = vpack.c.bf16 %v519_v20, %v516_v19  ;;  %v4473_v29 = vld [vmem:[#allocation4 + $0x2c8] ss:$16 sps:$4 sm:$0xff]   ;;  %v4481_v34 = vld [vmem:[#allocation4 + $0x2ac] ss:$16 sps:$4 sm:$0xff]   ;;  %v514_v60 = vld [vmem:[%s5357_s23 + $0x90] sm:$0xff] }
  0xa9   : > { %1145 = vmatpush1.bf16.msra.mxu0 %v4414_v31  ;;  %v502_v31 = vld [vmem:[%s5357_s23 + $0x30] sm:$0xff]  ;;  %v4488_v50 = vld [vmem:[#allocation4 + $0x168] ss:$16 sps:$4 sm:$0xff]   ;;  %v4508_v5 = vld [vmem:[#allocation4 + $0x10c] ss:$16 sps:$4 sm:$0xff]  }
  0xaa   : > { %1218 = vmatpush1.bf16.msra.mxu1 %v4415_v32  ;;  %1146 = vmatprep.subr.bf16.mxu0 %v4416_v35  ;;  %v505_v32 = vld [vmem:[%s5357_s23 + $0x48] sm:$0xff]  ;;  %v4518_v15 = vld [vmem:[#allocation7 + $0xa0] ss:$16 sps:$4 sm:$0xff]  }
  0xab   : > { %1276 = vmatprep.subr.bf16.mxu1 %v4420_v36  ;;  %v4476_v35 = vld [vmem:[#allocation4 + $0x1a8] ss:$16 sps:$4 sm:$0xff]   ;;  %v4511_v6 = vld [vmem:[#allocation4 + $0x20c] ss:$16 sps:$4 sm:$0xff]   ;;  %v4521_v19 = vld [vmem:[#allocation7 + $0x80] ss:$16 sps:$4 sm:$0xff]  }
  0xac   : > { %v4479_v36 = vld [vmem:[#allocation4 + $0x2a8] ss:$16 sps:$4 sm:$0xff]   ;;  %v4524_v22 = vld [vmem:[#allocation7 + $0x60] ss:$16 sps:$4 sm:$0xff]  }
  0xad   : > { %1236 = vmatmul.mubr.bf16.vlgmr.msra.gmra.mxu1 %v5378_v37  ;;  %1147 = vmatpush2.bf16.msra.mxu0 %v4421_v39  ;;  %v509_v39 = vld [vmem:[%s5357_s23 + $0x68] sm:$0xff] }
  0xae   : > { %1277 = vmatpush1.bf16.msra.mxu1 %v4418_v38  ;;  %1148 = vmatprep.subr.bf16.mxu0 %v4422_v40  ;;  %v5417_v38 = vpack.c.bf16 %v505_v32, %v502_v31  ;;  %v512_v40 = vld [vmem:[%s5357_s23 + $0x80] sm:$0xff]  ;;  %v4491_v51 = vld [vmem:[#allocation4 + $0x268] ss:$16 sps:$4 sm:$0xff]  }
  0xaf   : > { %1278 = vmatprep.subr.bf16.mxu1 %v4426_v41  ;;  %1245 = vmatprep.mubr.bf16.mxu1 %v5143_v0  ;;  %v4484_v41 = vld [vmem:[#allocation4 + $0x18c] ss:$16 sps:$4 sm:$0xff]   ;;  %v4520_v14 = vld [vmem:[#allocation7 + $0xa4] ss:$16 sps:$4 sm:$0xff]   ;;  %v4530_v31 = vld [vmem:[#allocation7 + $0x20] ss:$16 sps:$4 sm:$0xff]  }
  0xb0   : > { %v4526_v20 = vld [vmem:[#allocation7 + $0x64] ss:$16 sps:$4 sm:$0xff]  }
  0xb1   : > { %1149 = vmatpush2.bf16.msra.mxu0 %v4427_v43  ;;  %v4482_v43 = vld [vmem:[#allocation4 + $0x188] ss:$16 sps:$4 sm:$0xff]  }
  0xb2   : > { %1279 = vmatpush1.bf16.msra.mxu1 %v4424_v42  ;;  %1150 = vmatprep.subr.bf16.mxu0 %v4428_v44  ;;  %v4487_v42 = vld [vmem:[#allocation4 + $0x28c] ss:$16 sps:$4 sm:$0xff]   ;;  %v4485_v44 = vld [vmem:[#allocation4 + $0x288] ss:$16 sps:$4 sm:$0xff]  }
  0xb3   : > { %1280 = vmatprep.subr.bf16.mxu1 %v4432_v45  ;;  %v5421_v45 = vpack.c.bf16 %v512_v40, %v509_v39  ;;  %v4529_v23 = vld [vmem:[#allocation7 + $0x44] ss:$16 sps:$4 sm:$0xff]   ;;  %v4569_v40 = vld [vmem:[#allocation7 + $0x240] ss:$16 sps:$4 sm:$0xff]  }
  0xb4   : > { %v4535_v32 = vld [vmem:[#allocation7 + $0x4] ss:$16 sps:$4 sm:$0xff]  }
  0xb5   : > { %1151 = vmatpush2.bf16.msra.mxu0 %v4433_v47  ;;  %1246 = vmatmul.mubr.bf16.gmra.mxu1 %v5389_v62  ;;  %v511_v47 = vld [vmem:[%s5357_s23 + $0x78] sm:$0xff] }
  0xb6   : > { %1281 = vmatpush1.bf16.msra.mxu1 %v4430_v46  ;;  %1152 = vmatprep.subr.bf16.mxu0 %v4434_v48  ;;  %v508_v46 = vld [vmem:[%s5357_s23 + $0x60] sm:$0xff]  ;;  %v4490_v48 = vld [vmem:[#allocation4 + $0x16c] ss:$16 sps:$4 sm:$0xff]   ;;  %v4550_v39 = vld [vmem:[#allocation7 + $0x1a4] ss:$16 sps:$4 sm:$0xff]  }
  0xb7   : > { %1282 = vmatprep.subr.bf16.mxu1 %v4438_v49  ;;  %1255 = vmatprep.mubr.bf16.mxu1 %v5143_v0  ;;  %v4493_v49 = vld [vmem:[#allocation4 + $0x26c] ss:$16 sps:$4 sm:$0xff]  }
  0xb9   : > { %1153 = vmatpush2.bf16.msra.mxu0 %v4439_v53  ;;  %v518_v53 = vld [vmem:[%s5357_s23 + $0xb0] sm:$0xff] }
  0xba   : > { %1283 = vmatpush1.bf16.msra.mxu1 %v4436_v52  ;;  %1154 = vmatprep.subr.bf16.mxu0 %v4440_v55  ;;  %v515_v52 = vld [vmem:[%s5357_s23 + $0x98] sm:$0xff] }
  0xbb   : > { %1284 = vmatprep.subr.bf16.mxu1 %v4444_v56  ;;  %v4496_v55 = vld [vmem:[#allocation4 + $0x14c] ss:$16 sps:$4 sm:$0xff]   ;;  %v5431_v59 = vpack.c.bf16 %v518_v53, %v515_v52  ;;  %v4566_v52 = vld [vmem:[#allocation7 + $0x140] ss:$16 sps:$4 sm:$0xff]   ;;  %v4592_v53 = vld [vmem:[#allocation7 + $0x3c4] ss:$16 sps:$4 sm:$0xff]  }
  0xbc   : > { %v4499_v56 = vld [vmem:[#allocation4 + $0x24c] ss:$16 sps:$4 sm:$0xff]  }
  0xbd   : > { %1155 = vmatpush2.bf16.msra.mxu0 %v4445_v58  ;;  %1256 = vmatmul.mubr.bf16.gmra.mxu1 %v5395_v9  ;;  %v4497_v58 = vld [vmem:[#allocation4 + $0x248] ss:$16 sps:$4 sm:$0xff]  }
  0xbe   : > { %1285 = vmatpush1.bf16.msra.mxu1 %v4442_v57  ;;  %1156 = vmatprep.subr.bf16.mxu0 %v4446_v61  ;;  %v4494_v57 = vld [vmem:[#allocation4 + $0x148] ss:$16 sps:$4 sm:$0xff]  }
  0xbf   : > { %1286 = vmatprep.subr.bf16.mxu1 %v4450_v63  ;;  %1265 = vmatprep.mubr.bf16.mxu1 %v5143_v0  ;;  %v517_v61 = vld [vmem:[%s5357_s23 + $0xa8] sm:$0xff] }
  0xc0   : > { %v4502_v63 = vld [vmem:[#allocation4 + $0x12c] ss:$16 sps:$4 sm:$0xff]  }
  0xc1   : > { %1157 = vmatpush2.bf16.msra.mxu0 %v4451_v2  ;;  %v4500_v2 = vld [vmem:[#allocation4 + $0x128] ss:$16 sps:$4 sm:$0xff]  }
  0xc2   : > { %1287 = vmatpush1.bf16.msra.mxu1 %v4448_v1  ;;  %1158 = vmatprep.subr.bf16.mxu0 %v4452_v3  ;;  %v4505_v1 = vld [vmem:[#allocation4 + $0x22c] ss:$16 sps:$4 sm:$0xff]   ;;  %v4503_v3 = vld [vmem:[#allocation4 + $0x228] ss:$16 sps:$4 sm:$0xff]  }
  0xc3   : > { %1288 = vmatprep.subr.bf16.mxu1 %v4456_v4  ;;  %v5437_v4 = vpack.c.bf16 %v517_v61, %v514_v60  ;;  %v4578_v60 = vld [vmem:[#allocation7 + $0x100] ss:$16 sps:$4 sm:$0xff]   ;;  %v4604_v61 = vld [vmem:[#allocation7 + $0x384] ss:$16 sps:$4 sm:$0xff]  }
  0xc5   : > { %1159 = vmatpush2.bf16.msra.mxu0 %v4457_v8  ;;  %1266 = vmatmul.mubr.bf16.gmra.mxu1 %v5407_v24  ;;  %v4509_v8 = vld [vmem:[#allocation4 + $0x208] ss:$16 sps:$4 sm:$0xff]  }
  0xc6   : > { %1289 = vmatpush1.bf16.msra.mxu1 %v4454_v7  ;;  %1160 = vmatprep.subr.bf16.mxu0 %v4458_v10  ;;  %v4506_v7 = vld [vmem:[#allocation4 + $0x108] ss:$16 sps:$4 sm:$0xff]  }
  0xc7   : > { %1290 = vmatprep.subr.bf16.mxu1 %v4462_v11  ;;  %1308 = vmatprep.mubr.bf16.mxu1 %v5384_v54  ;;  %v5429_v54 = vpack.c.bf16 %v511_v47, %v508_v46  ;;  %v4514_v10 = vld [vmem:[#allocation7 + $0xe4] ss:$16 sps:$4 sm:$0xff]   ;;  %v4512_v11 = vld [vmem:[#allocation7 + $0xe0] ss:$16 sps:$4 sm:$0xff]  }
  0xc8   : > { %v4562_v46 = vld [vmem:[#allocation7 + $0x164] ss:$16 sps:$4 sm:$0xff]   ;;  %v4581_v47 = vld [vmem:[#allocation7 + $0x200] ss:$16 sps:$4 sm:$0xff]  }
  0xc9   : > { %1161 = vmatpush2.bf16.msra.mxu0 %v4463_v13  ;;  %v4515_v13 = vld [vmem:[#allocation7 + $0xc0] ss:$16 sps:$4 sm:$0xff]  }
  0xca   : > { %1291 = vmatpush1.bf16.msra.mxu1 %v4460_v12  ;;  %1349 = vmatprep.subr.bf16.mxu0 %v4469_v17  ;;  %v4517_v12 = vld [vmem:[#allocation7 + $0xc4] ss:$16 sps:$4 sm:$0xff]   ;;  %v4539_v17 = vld [vmem:[#allocation7 + $0x2e0] ss:$16 sps:$4 sm:$0xff]  }
  0xcb   : > { %1292 = vmatprep.subr.bf16.mxu1 %v4466_v16  ;;  %v4523_v16 = vld [vmem:[#allocation7 + $0x84] ss:$16 sps:$4 sm:$0xff]  }
  0xcc   : > { %1163 = vmatmul.mubr.bf16.vlgmr.msra.gmra.mxu0 %v5403_v21 }
  0xcd   : > { %1350 = vmatpush1.bf16.msra.mxu0 %v4467_v25  ;;  %1172 = vmatprep.mubr.bf16.mxu0 %v5409_v30  ;;  %v4551_v25 = vld [vmem:[#allocation7 + $0x2a0] ss:$16 sps:$4 sm:$0xff]  }
  0xce   : > { %1293 = vmatpush2.bf16.msra.mxu1 %v4464_v18  ;;  %1351 = vmatprep.subr.bf16.mxu0 %v4475_v27  ;;  %v4541_v18 = vld [vmem:[#allocation7 + $0x2e4] ss:$16 sps:$4 sm:$0xff]   ;;  %v4527_v27 = vld [vmem:[#allocation7 + $0x40] ss:$16 sps:$4 sm:$0xff]  }
  0xcf   : > { %1294 = vmatprep.subr.bf16.mxu1 %v4472_v26  ;;  %v4553_v26 = vld [vmem:[#allocation7 + $0x2a4] ss:$16 sps:$4 sm:$0xff]  }
  0xd1   : > { %1352 = vmatpush1.bf16.msra.mxu0 %v4473_v29  ;;  %v4557_v29 = vld [vmem:[#allocation7 + $0x280] ss:$16 sps:$4 sm:$0xff]  }
  0xd2   : > { %1295 = vmatpush2.bf16.msra.mxu1 %v4470_v28  ;;  %1353 = vmatprep.subr.bf16.mxu0 %v4481_v34  ;;  %v4532_v28 = vld [vmem:[#allocation7 + $0x24] ss:$16 sps:$4 sm:$0xff]   ;;  %v4536_v34 = vld [vmem:[#allocation7 + $0x1e0] ss:$16 sps:$4 sm:$0xff]  }
  0xd3   : > { %1296 = vmatprep.subr.bf16.mxu1 %v4478_v33  ;;  %v4563_v33 = vld [vmem:[#allocation7 + $0x260] ss:$16 sps:$4 sm:$0xff]  }
  0xd4   : > { %1173 = vmatmul.mubr.bf16.gmra.mxu0 %v5417_v38 }
  0xd5   : > { %1354 = vmatpush1.bf16.msra.mxu0 %v4479_v36  ;;  %1182 = vmatprep.mubr.bf16.mxu0 %v5421_v45  ;;  %v4542_v36 = vld [vmem:[#allocation7 + $0x1c0] ss:$16 sps:$4 sm:$0xff]  }
  0xd6   : > { %1297 = vmatpush2.bf16.msra.mxu1 %v4476_v35  ;;  %1355 = vmatprep.subr.bf16.mxu0 %v4487_v42  ;;  %v4544_v35 = vld [vmem:[#allocation7 + $0x1c4] ss:$16 sps:$4 sm:$0xff]  }
  0xd7   : > { %1298 = vmatprep.subr.bf16.mxu1 %v4484_v41  ;;  %v4548_v41 = vld [vmem:[#allocation7 + $0x1a0] ss:$16 sps:$4 sm:$0xff]   ;;  %v4556_v42 = vld [vmem:[#allocation7 + $0x184] ss:$16 sps:$4 sm:$0xff]  }
  0xd9   : > { %1356 = vmatpush1.bf16.msra.mxu0 %v4485_v44  ;;  %v4554_v44 = vld [vmem:[#allocation7 + $0x180] ss:$16 sps:$4 sm:$0xff]  }
  0xda   : > { %1299 = vmatpush2.bf16.msra.mxu1 %v4482_v43  ;;  %1357 = vmatprep.subr.bf16.mxu0 %v4493_v49  ;;  %v4575_v43 = vld [vmem:[#allocation7 + $0x220] ss:$16 sps:$4 sm:$0xff]   ;;  %v4586_v49 = vld [vmem:[#allocation7 + $0x3e4] ss:$16 sps:$4 sm:$0xff]  }
  0xdb   : > { %1300 = vmatprep.subr.bf16.mxu1 %v4490_v48  ;;  %v4560_v48 = vld [vmem:[#allocation7 + $0x160] ss:$16 sps:$4 sm:$0xff]  }
  0xdc   : > { %1183 = vmatmul.mubr.bf16.gmra.mxu0 %v5429_v54 }
  0xdd   : > { %1358 = vmatpush1.bf16.msra.mxu0 %v4491_v51  ;;  %1192 = vmatprep.mubr.bf16.mxu0 %v5431_v59  ;;  %v4584_v51 = vld [vmem:[#allocation7 + $0x3e0] ss:$16 sps:$4 sm:$0xff]  }
  0xde   : > { %1301 = vmatpush2.bf16.msra.mxu1 %v4488_v50  ;;  %1359 = vmatprep.subr.bf16.mxu0 %v4499_v56  ;;  %v4568_v50 = vld [vmem:[#allocation7 + $0x144] ss:$16 sps:$4 sm:$0xff]   ;;  %v4572_v56 = vld [vmem:[#allocation7 + $0x120] ss:$16 sps:$4 sm:$0xff]  }
  0xdf   : > { %1302 = vmatprep.subr.bf16.mxu1 %v4496_v55  ;;  %v4590_v55 = vld [vmem:[#allocation7 + $0x3c0] ss:$16 sps:$4 sm:$0xff]  }
  0xe1   : > { %1360 = vmatpush1.bf16.msra.mxu0 %v4497_v58  ;;  %v4580_v58 = vld [vmem:[#allocation7 + $0x104] ss:$16 sps:$4 sm:$0xff]  }
  0xe2   : > { %1303 = vmatpush2.bf16.msra.mxu1 %v4494_v57  ;;  %1361 = vmatprep.subr.bf16.mxu0 %v4505_v1  ;;  %v4598_v57 = vld [vmem:[#allocation7 + $0x3a4] ss:$16 sps:$4 sm:$0xff]   ;;  %v4602_v1 = vld [vmem:[#allocation7 + $0x380] ss:$16 sps:$4 sm:$0xff]  }
  0xe3   : > { %1304 = vmatprep.subr.bf16.mxu1 %v4502_v63  ;;  %v4589_v63 = vld [vmem:[#allocation7 + $0xec] ss:$16 sps:$4 sm:$0xff]  }
  0xe4   : > { %1193 = vmatmul.mubr.bf16.gmra.mxu0 %v5437_v4 }
  0xe5   : > { %1362 = vmatpush1.bf16.msra.mxu0 %v4503_v3  ;;  %1381 = vmatprep.mubr.bf16.mxu0 %v5143_v0  ;;  %v4608_v3 = vld [vmem:[#allocation7 + $0x360] ss:$16 sps:$4 sm:$0xff]  }
  0xe6   : > { %1305 = vmatpush2.bf16.msra.mxu1 %v4500_v2  ;;  %1363 = vmatprep.subr.bf16.mxu0 %v4511_v6  ;;  %v4610_v2 = vld [vmem:[#allocation7 + $0x364] ss:$16 sps:$4 sm:$0xff]  }
  0xe7   : > { %1306 = vmatprep.subr.bf16.mxu1 %v4508_v5  ;;  %v4614_v5 = vld [vmem:[#allocation7 + $0x340] ss:$16 sps:$4 sm:$0xff]   ;;  %v4622_v6 = vld [vmem:[#allocation7 + $0x324] ss:$16 sps:$4 sm:$0xff]  }
  0xe9   : > { %1364 = vmatpush1.bf16.msra.mxu0 %v4509_v8  ;;  %v4628_v8 = vld [vmem:[#allocation7 + $0x304] ss:$16 sps:$4 sm:$0xff]  }
  0xea   : > { %1307 = vmatpush2.bf16.msra.mxu1 %v4506_v7  ;;  %2260 = vmatprep.subr.bf16.mxu0 %v4514_v10  ;;  %v4620_v7 = vld [vmem:[#allocation7 + $0x320] ss:$16 sps:$4 sm:$0xff]  }
  0xeb   : > { %2333 = vmatprep.subr.bf16.mxu1 %v4541_v18  ;;  %v4626_v10 = vld [vmem:[#allocation7 + $0x300] ss:$16 sps:$4 sm:$0xff]  }
  0xec   : > { %1382 = vmatmul.mubr.bf16.vlgmr.msra.gmra.mxu0 %v5378_v37  ;;  %v4547_v37 = vld [vmem:[#allocation7 + $0x2c4] ss:$16 sps:$4 sm:$0xff]  }
  0xed   : > { %1309 = vmatmul.mubr.bf16.vlgmr.msra.gmra.mxu1 %v5403_v21  ;;  %1391 = vmatprep.mubr.bf16.mxu0 %v5143_v0  ;;  %v4545_v21 = vld [vmem:[#allocation7 + $0x2c0] ss:$16 sps:$4 sm:$0xff]  }
  0xee   : > { %1318 = vmatprep.mubr.bf16.mxu1 %v5409_v30  ;;  %2261 = vmatpush1.bf16.msra.mxu0 %v4512_v11  ;;  %v4565_v30 = vld [vmem:[#allocation7 + $0x264] ss:$16 sps:$4 sm:$0xff]   ;;  %v4637_v11 = vld [vmem:[#allocation7 + $0x2ec] ss:$16 sps:$4 sm:$0xff]  }
  0xef   : > { %2262 = vmatprep.subr.bf16.mxu0 %v4517_v12  ;;  %2334 = vmatpush1.bf16.msra.mxu1 %v4539_v17  ;;  %v630_v17 = vlaneseq }
  0xf0   : > { %2335 = vmatprep.subr.bf16.mxu1 %v4547_v37 }
  0xf1   : > { %v5455_v37 = vshrl.u32 %v630_v17, 7  ;;  %v4607_v17 = vld [vmem:[#allocation7 + $0x8c] ss:$16 sps:$4 sm:$0xff]  }
  0xf2   : > { %2263 = vmatpush1.bf16.msra.mxu0 %v4515_v13 }
  0xf3   : > { %2264 = vmatprep.subr.bf16.mxu0 %v4520_v14  ;;  %2336 = vmatpush1.bf16.msra.mxu1 %v4545_v21  ;;  %v5461_v21 = vsub.s32 0, %v5455_v37 }
  0xf4   : > { %1392 = vmatmul.mubr.bf16.gmra.mxu0 %v5389_v62  ;;  %v4559_v62 = vld [vmem:[#allocation7 + $0x284] ss:$16 sps:$4 sm:$0xff]   ;;  %2337 = vmatprep.subr.bf16.mxu1 %v4553_v26 }
  0xf5   : > { %1319 = vmatmul.mubr.bf16.gmra.mxu1 %v5417_v38  ;;  %1401 = vmatprep.mubr.bf16.mxu0 %v5143_v0  ;;  %v4571_v38 = vld [vmem:[#allocation7 + $0x244] ss:$16 sps:$4 sm:$0xff]  }
  0xf6   : > { %1328 = vmatprep.mubr.bf16.mxu1 %v5421_v45  ;;  %2265 = vmatpush1.bf16.msra.mxu0 %v4518_v15  ;;  %v4583_v45 = vld [vmem:[#allocation7 + $0x204] ss:$16 sps:$4 sm:$0xff]  }
  0xf7   : > { %2266 = vmatprep.subr.bf16.mxu0 %v4523_v16  ;;  %2338 = vmatpush1.bf16.msra.mxu1 %v4551_v25 }
  0xf8   : > { %2339 = vmatprep.subr.bf16.mxu1 %v4559_v62 }
  0xfa   : > { %2267 = vmatpush1.bf16.msra.mxu0 %v4521_v19 }
  0xfb   : > { %2268 = vmatprep.subr.bf16.mxu0 %v4526_v20  ;;  %2340 = vmatpush1.bf16.msra.mxu1 %v4557_v29  ;;  %v5458_v20 = vsub.s32 1, %v5455_v37 }
  0xfc   : > { %1402 = vmatmul.mubr.bf16.gmra.mxu0 %v5395_v9  ;;  %v4533_v9 = vld [vmem:[#allocation7] ss:$16 sps:$4 sm:$0xff]   ;;  %2341 = vmatprep.subr.bf16.mxu1 %v4565_v30 }
  0xfd   : > { %1329 = vmatmul.mubr.bf16.gmra.mxu1 %v5429_v54  ;;  %1411 = vmatprep.mubr.bf16.mxu0 %v5143_v0  ;;  %v4538_v0 = vld [vmem:[#allocation7 + $0x1e4] ss:$16 sps:$4 sm:$0xff]  }
  0xfe   : > { %1338 = vmatprep.mubr.bf16.mxu1 %v5431_v59  ;;  %2269 = vmatpush1.bf16.msra.mxu0 %v4524_v22  ;;  %v4574_v54 = vld [vmem:[#allocation7 + $0x124] ss:$16 sps:$4 sm:$0xff]   ;;  %v4596_v59 = vld [vmem:[#allocation7 + $0x3a0] ss:$16 sps:$4 sm:$0xff]   ;;  %v5463_v22 = vld [vmem:[#allocation6] sm:$0xf] }
  0xff   : > { %2270 = vmatprep.subr.bf16.mxu0 %v4529_v23  ;;  %2342 = vmatpush1.bf16.msra.mxu1 %v4563_v33  ;;  %v5467_v25 = vrot.slane %v5463_v22, %v5458_v20  ;;  %v5471_v26 = vrot.slane %v5463_v22, %v5461_v21 }
 0x100   : > { %2343 = vmatprep.subr.bf16.mxu1 %v4571_v38 }
 0x102   : > { %2271 = vmatpush1.bf16.msra.mxu0 %v4527_v27 }
 0x103   : > { %2272 = vmatprep.subr.bf16.mxu0 %v4532_v28  ;;  %2344 = vmatpush1.bf16.msra.mxu1 %v4569_v40 }
 0x104   : > { %1412 = vmatmul.mubr.bf16.gmra.mxu0 %v5407_v24  ;;  %v4577_v24 = vld [vmem:[#allocation7 + $0x224] ss:$16 sps:$4 sm:$0xff]  }
 0x105   : > { %1339 = vmatmul.mubr.bf16.gmra.mxu1 %v5437_v4  ;;  %2345 = vmatprep.subr.bf16.mxu1 %v4577_v24  ;;  %v4616_v4 = vld [vmem:[#allocation7 + $0x344] ss:$16 sps:$4 sm:$0xff]  }
 0x106   : > { %2273 = vmatpush1.bf16.msra.mxu0 %v4530_v31 }
 0x107   : > { %2274 = vmatprep.subr.bf16.mxu0 %v4535_v32  ;;  %2346 = vmatpush1.bf16.msra.mxu1 %v4575_v43 }
 0x108   : > { %2347 = vmatprep.subr.bf16.mxu1 %v4583_v45 }
 0x10a   : > { %2275 = vmatpush1.bf16.msra.mxu0 %v4533_v9 }
 0x10b   : > { %2276 = vmatprep.subr.bf16.mxu0 %v4538_v0  ;;  %2348 = vmatpush1.bf16.msra.mxu1 %v4581_v47 }
 0x10c   : > { %2349 = vmatprep.subr.bf16.mxu1 %v4586_v49 }
 0x10e   : > { %2277 = vmatpush2.bf16.msra.mxu0 %v4536_v34 }
 0x10f   : > { %2278 = vmatprep.subr.bf16.mxu0 %v4544_v35  ;;  %2350 = vmatpush2.bf16.msra.mxu1 %v4584_v51 }
 0x110   : > { %2351 = vmatprep.subr.bf16.mxu1 %v4592_v53 }
 0x112   : > { %2279 = vmatpush2.bf16.msra.mxu0 %v4542_v36 }
 0x113   : > { %2280 = vmatprep.subr.bf16.mxu0 %v4550_v39  ;;  %2352 = vmatpush2.bf16.msra.mxu1 %v4590_v55 }
 0x114   : > { %2353 = vmatprep.subr.bf16.mxu1 %v4598_v57 }
 0x116   : > { %2281 = vmatpush2.bf16.msra.mxu0 %v4548_v41 }
 0x117   : > { %2282 = vmatprep.subr.bf16.mxu0 %v4556_v42  ;;  %2354 = vmatpush2.bf16.msra.mxu1 %v4596_v59 }
 0x118   : > { %2355 = vmatprep.subr.bf16.mxu1 %v4604_v61  ;;  %v4593_v61 = vld [vmem:[#allocation7 + $0xc8] ss:$16 sps:$4 sm:$0xff]  }
 0x11a   : > { %2283 = vmatpush2.bf16.msra.mxu0 %v4554_v44 }
 0x11b   : > { %2284 = vmatprep.subr.bf16.mxu0 %v4562_v46  ;;  %2356 = vmatpush2.bf16.msra.mxu1 %v4602_v1 }
 0x11c   : > { %2357 = vmatprep.subr.bf16.mxu1 %v4610_v2 }
 0x11e   : > { %2285 = vmatpush2.bf16.msra.mxu0 %v4560_v48 }
 0x11f   : > { %2286 = vmatprep.subr.bf16.mxu0 %v4568_v50  ;;  %2358 = vmatpush2.bf16.msra.mxu1 %v4608_v3  ;;  %v4587_v50 = vld [vmem:[#allocation7 + $0xe8] ss:$16 sps:$4 sm:$0xff]   ;;  %v4601_v3 = vld [vmem:[#allocation7 + $0xac] ss:$16 sps:$4 sm:$0xff]  }
 0x120   : > { %2359 = vmatprep.subr.bf16.mxu1 %v4616_v4 }
 0x122   : > { %2287 = vmatpush2.bf16.msra.mxu0 %v4566_v52 }
 0x123   : > { %2288 = vmatprep.subr.bf16.mxu0 %v4574_v54  ;;  %2360 = vmatpush2.bf16.msra.mxu1 %v4614_v5  ;;  %v4595_v54 = vld [vmem:[#allocation7 + $0xcc] ss:$16 sps:$4 sm:$0xff]  }
 0x124   : > { %2361 = vmatprep.subr.bf16.mxu1 %v4622_v6 }
 0x126   : > { %2289 = vmatpush2.bf16.msra.mxu0 %v4572_v56 }
 0x127   : > { %2290 = vmatprep.subr.bf16.mxu0 %v4580_v58  ;;  %2362 = vmatpush2.bf16.msra.mxu1 %v4620_v7 }
 0x128   : > { %2363 = vmatprep.subr.bf16.mxu1 %v4628_v8 }
 0x12a   : > { %2291 = vmatpush2.bf16.msra.mxu0 %v4578_v60 }
 0x12b   : > { %2406 = vmatprep.subr.bf16.mxu0 %v4589_v63  ;;  %2364 = vmatpush2.bf16.msra.mxu1 %v4626_v10 }
 0x12c   : > { %2479 = vmatprep.subr.bf16.mxu1 %v4637_v11 }
 0x16d   : > { %v1237_v12 = vpop.f32.mrf.mxu1 }
 0x16f   : > { %v1239_v13 = vpop.f32.mrf.mxu1 }
 0x171   : > { %v1241_v14 = vpop.f32.mrf.mxu1 }
 0x173   : > { %v1243_v15 = vpop.f32.mrf.mxu1 }
 0x175   : > { %v1247_v16 = vpop.f32.mrf.mxu1 }
 0x177   : > { %v1249_v18 = vpop.f32.mrf.mxu1 }
 0x179   : > { %v1251_v19 = vpop.f32.mrf.mxu1 }
 0x17b   : > { %v1253_v23 = vpop.f32.mrf.mxu1 }
 0x17d   : > { %v5473_v28 = vpop.f32.mrf.mxu1 }
 0x17f   : > { %v1259_v9 = vpop.f32.mrf.mxu1 }
 0x181   : > { %v1261_v24 = vpop.f32.mrf.mxu1 }
 0x183   : > { %v1263_v53 = vpop.f32.mrf.mxu1 }
 0x185   : > { %v1267_v2 = vpop.f32.mrf.mxu1 }
 0x18c   : > { %v1164_v62 = vpop.f32.mrf.mxu0 }
 0x18d   : > { %v1165_v30 = vadd.f32 %v1164_v62, %v5471_v26 }
 0x18e   : > { %v1166_v27 = vpop.f32.mrf.mxu0 }
 0x18f   : > { %v1167_v29 = vadd.f32 %v1166_v27, %v5467_v25  ;;  %v1238_v36 = vadd.f32 %v1237_v12, %v1165_v30  ;;  %v4605_v30 = vld [vmem:[#allocation7 + $0x88] ss:$16 sps:$4 sm:$0xff]  }
 0x190   : > { %v1168_v31 = vpop.f32.mrf.mxu0 }
 0x191   : > { %v1169_v32 = vadd.f32 %v1168_v31, %v5471_v26  ;;  %v1240_v0 = vadd.f32 %v1239_v13, %v1167_v29  ;;  %v1422_v45 = vmax.f32 %v1238_v36, 0.0  ;;  %v4599_v13 = vld [vmem:[#allocation7 + $0xa8] ss:$16 sps:$4 sm:$0xff]   ;;  %v644_v36 = vsub.s32 3, %v5455_v37 }
 0x192   : > { %v1170_v33 = vpop.f32.mrf.mxu0 }
 0x193   : > { %v1242_v34 = vadd.f32 %v1241_v14, %v1169_v32  ;;  %v1171_v35 = vadd.f32 %v1170_v33, %v5467_v25  ;;  %v1423_v42 = vmax.f32 %v1240_v0, 0.0  ;;  %v1269_v14 = vpop.f32.mrf.mxu1  ;;  %v4613_v0 = vld [vmem:[#allocation7 + $0x6c] ss:$16 sps:$4 sm:$0xff]  }
 0x194   : > { %v1174_v38 = vpop.f32.mrf.mxu0 }
 0x195   : > { %v1244_v39 = vadd.f32 %v1243_v15, %v1171_v35  ;;  %v1426_v40 = vmax.f32 %v1242_v34, 0.0  ;;  %v1175_v46 = vadd.f32 %v1174_v38, %v5471_v26  ;;  %v1271_v32 = vpop.f32.mrf.mxu1 }
 0x196   : > { %v1176_v41 = vpop.f32.mrf.mxu0 }
 0x197   : > { %v1427_v43 = vmax.f32 %v1244_v39, 0.0  ;;  %v1177_v44 = vadd.f32 %v1176_v41, %v5467_v25  ;;  %v5484_v51 = vpack.c.bf16 %v1426_v40, %v1422_v45  ;;  %v1248_v58 = vadd.f32 %v1247_v16, %v1175_v46  ;;  %v4619_v46 = vld [vmem:[#allocation7 + $0x4c] ss:$16 sps:$4 sm:$0xff]  }
 0x198   : > { %v1178_v47 = vpop.f32.mrf.mxu0  ;;  %v640_v40 = vsub.s32 2, %v5455_v37 }
 0x199   : > { %v1179_v48 = vadd.f32 %v1178_v47, %v5471_v26  ;;  %v5482_v49 = vpack.c.bf16 %v1427_v43, %v1423_v42  ;;  %v1250_v55 = vadd.f32 %v1249_v18, %v1177_v44  ;;  %v1430_v7 = vmax.f32 %v1248_v58, 0.0  ;;  %v4611_v42 = vld [vmem:[#allocation7 + $0x68] ss:$16 sps:$4 sm:$0xff]   ;;  %v1273_v43 = vpop.f32.mrf.mxu1 }
 0x19a   : > { %v1180_v52 = vpop.f32.mrf.mxu0 }
 0x19b   : > { %v1252_v56 = vadd.f32 %v1251_v19, %v1179_v48  ;;  %v1181_v57 = vadd.f32 %v1180_v52, %v5467_v25  ;;  %2292 = vmatprep.mubr.bf16.mxu0 %v5482_v49  ;;  %v1431_v4 = vmax.f32 %v1250_v55, 0.0 }
 0x19c   : > { %v1184_v59 = vpop.f32.mrf.mxu0  ;;  %2293 = vmatmul.mubr.bf16.vlgmr.msra.gmra.mxu0 %v5484_v51 }
 0x19d   : > { %v1254_v60 = vadd.f32 %v1253_v23, %v1181_v57  ;;  %2407 = vmatpush1.bf16.msra.mxu0 %v4587_v50  ;;  %v1434_v63 = vmax.f32 %v1252_v56, 0.0  ;;  %v1185_v8 = vadd.f32 %v1184_v59, %v5471_v26 }
 0x19e   : > { %v1186_v1 = vpop.f32.mrf.mxu0  ;;  %2408 = vmatprep.subr.bf16.mxu0 %v4595_v54 }
 0x19f   : > { %v1435_v5 = vmax.f32 %v1254_v60, 0.0  ;;  %v1187_v6 = vadd.f32 %v1186_v1, %v5467_v25  ;;  %v5494_v16 = vpack.c.bf16 %v1434_v63, %v1430_v7  ;;  %v1258_v62 = vadd.f32 %v5473_v28, %v1185_v8  ;;  %v4625_v60 = vld [vmem:[#allocation7 + $0x2c] ss:$16 sps:$4 sm:$0xff]   ;;  %v4623_v7 = vld [vmem:[#allocation7 + $0x28] ss:$16 sps:$4 sm:$0xff]  }
 0x1a0   : > { %v1188_v10 = vpop.f32.mrf.mxu0 }
 0x1a1   : > { %v1189_v11 = vadd.f32 %v1188_v10, %v5471_v26  ;;  %2409 = vmatpush1.bf16.msra.mxu0 %v4593_v61  ;;  %v5492_v12 = vpack.c.bf16 %v1435_v5, %v1431_v4  ;;  %v1260_v18 = vadd.f32 %v1259_v9, %v1187_v6  ;;  %v1438_v38 = vmax.f32 %v1258_v62, 0.0 }
 0x1a2   : > { %v1190_v15 = vpop.f32.mrf.mxu0  ;;  %2410 = vmatprep.subr.bf16.mxu0 %v4601_v3 }
 0x1a3   : > { %v1262_v19 = vadd.f32 %v1261_v24, %v1189_v11  ;;  %v1191_v23 = vadd.f32 %v1190_v15, %v5467_v25  ;;  %2302 = vmatprep.mubr.bf16.mxu0 %v5492_v12  ;;  %v1439_v34 = vmax.f32 %v1260_v18, 0.0 }
 0x1a4   : > { %v1194_v27 = vpop.f32.mrf.mxu0  ;;  %2303 = vmatmul.mubr.bf16.gmra.mxu0 %v5494_v16 }
 0x1a5   : > { %v1264_v29 = vadd.f32 %v1263_v53, %v1191_v23  ;;  %2411 = vmatpush1.bf16.msra.mxu0 %v4599_v13  ;;  %v1442_v31 = vmax.f32 %v1262_v19, 0.0  ;;  %v1195_v28 = vadd.f32 %v1194_v27, %v5471_v26  ;;  %v5519_v53 = vrot.slane %v5463_v22, %v640_v40  ;;  %v4631_v13 = vld [vmem:[#allocation7 + $0xc] ss:$16 sps:$4 sm:$0xff]  }
 0x1a6   : > { %v1196_v33 = vpop.f32.mrf.mxu0  ;;  %2412 = vmatprep.subr.bf16.mxu0 %v4607_v17 }
 0x1a7   : > { %v1443_v9 = vmax.f32 %v1264_v29, 0.0  ;;  %v1197_v35 = vadd.f32 %v1196_v33, %v5467_v25  ;;  %v5507_v45 = vpack.c.bf16 %v1442_v31, %v1438_v38  ;;  %v1268_v52 = vadd.f32 %v1267_v2, %v1195_v28  ;;  %v4629_v29 = vld [vmem:[#allocation7 + $0x8] ss:$16 sps:$4 sm:$0xff]   ;;  %v4634_v33 = vld [vmem:[#allocation7 + $0x1ec] ss:$16 sps:$4 sm:$0xff]  }
 0x1a8   : > { %v1198_v39 = vpop.f32.mrf.mxu0 }
 0x1a9   : > { %v1199_v41 = vadd.f32 %v1198_v39, %v5471_v26  ;;  %2413 = vmatpush1.bf16.msra.mxu0 %v4605_v30  ;;  %v5505_v24 = vpack.c.bf16 %v1443_v9, %v1439_v34  ;;  %v1270_v47 = vadd.f32 %v1269_v14, %v1197_v35  ;;  %v5514_v26 = vrot.slane %v5463_v22, %v644_v36 }
 0x1aa   : > { %v1200_v44 = vpop.f32.mrf.mxu0  ;;  %2414 = vmatprep.subr.bf16.mxu0 %v4613_v0  ;;  %v1446_v2 = vmax.f32 %v1268_v52, 0.0  ;;  %v4643_v52 = vld [vmem:[#allocation7 + $0x2cc] ss:$16 sps:$4 sm:$0xff]  }
 0x1ab   : > { %v1272_v48 = vadd.f32 %v1271_v32, %v1199_v41  ;;  %v1201_v50 = vadd.f32 %v1200_v44, %v5467_v25  ;;  %2312 = vmatprep.mubr.bf16.mxu0 %v5505_v24  ;;  %v4617_v25 = vld [vmem:[#allocation7 + $0x48] ss:$16 sps:$4 sm:$0xff]   ;;  %v1447_v61 = vmax.f32 %v1270_v47, 0.0 }
 0x1ac   : > { %v1383_v55 = vpop.f32.mrf.mxu0  ;;  %2313 = vmatmul.mubr.bf16.gmra.mxu0 %v5507_v45  ;;  %v4635_v44 = vld [vmem:[#allocation7 + $0x2e8] ss:$16 sps:$4 sm:$0xff]  }
 0x1ad   : > { %v1310_v54 = vpop.f32.mrf.mxu1  ;;  %v1274_v56 = vadd.f32 %v1273_v43, %v1201_v50  ;;  %2415 = vmatpush1.bf16.msra.mxu0 %v4611_v42  ;;  %v1450_v57 = vmax.f32 %v1272_v48, 0.0  ;;  %v4640_v50 = vld [vmem:[#allocation7 + $0x1cc] ss:$16 sps:$4 sm:$0xff]  }
 0x1ae   : > { %v1385_v59 = vpop.f32.mrf.mxu0  ;;  %2416 = vmatprep.subr.bf16.mxu0 %v4619_v46  ;;  %v1311_v22 = vadd.f32 %v1310_v54, %v5519_v53 }
 0x1af   : > { %v1312_v58 = vpop.f32.mrf.mxu1  ;;  %v1451_v63 = vmax.f32 %v1274_v56, 0.0  ;;  %v5527_v11 = vpack.c.bf16 %v1450_v57, %v1446_v2 }
 0x1b0   : > { %v1313_v1 = vadd.f32 %v1312_v58, %v5514_v26  ;;  %v1387_v4 = vpop.f32.mrf.mxu0  ;;  %v1384_v18 = vadd.f32 %v1383_v55, %v1311_v22 }
 0x1b1   : > { %v1314_v3 = vpop.f32.mrf.mxu1  ;;  %2417 = vmatpush1.bf16.msra.mxu0 %v4617_v25  ;;  %v5525_v6 = vpack.c.bf16 %v1451_v63, %v1447_v61  ;;  %v4638_v63 = vld [vmem:[#allocation7 + $0x1c8] ss:$16 sps:$4 sm:$0xff]  }
 0x1b2   : > { %v1315_v5 = vadd.f32 %v1314_v3, %v5519_v53  ;;  %v1389_v10 = vpop.f32.mrf.mxu0  ;;  %2418 = vmatprep.subr.bf16.mxu0 %v4625_v60  ;;  %v1386_v14 = vadd.f32 %v1385_v59, %v1313_v1  ;;  %v1424_v35 = vmax.f32 %v1384_v18, 0.0  ;;  %v4641_v1 = vld [vmem:[#allocation7 + $0x2c8] ss:$16 sps:$4 sm:$0xff]   ;;  %v4646_v3 = vld [vmem:[#allocation7 + $0x1ac] ss:$16 sps:$4 sm:$0xff]  }
 0x1b3   : > { %v1316_v8 = vpop.f32.mrf.mxu1  ;;  %2322 = vmatprep.mubr.bf16.mxu0 %v5525_v6 }
 0x1b4   : > { %v1388_v15 = vadd.f32 %v1387_v4, %v1315_v5  ;;  %v1317_v17 = vadd.f32 %v1316_v8, %v5514_v26  ;;  %2323 = vmatmul.mubr.bf16.gmra.mxu0 %v5527_v11  ;;  %v1393_v23 = vpop.f32.mrf.mxu0  ;;  %v1425_v0 = vmax.f32 %v1386_v14, 0.0  ;;  %v4649_v4 = vld [vmem:[#allocation7 + $0x2ac] ss:$16 sps:$4 sm:$0xff]  }
 0x1b5   : > { %v1320_v19 = vpop.f32.mrf.mxu1  ;;  %2419 = vmatpush1.bf16.msra.mxu0 %v4623_v7  ;;  %2438 = vmatprep.mubr.bf16.mxu0 %v5482_v49  ;;  %v4632_v49 = vld [vmem:[#allocation7 + $0x1e8] ss:$16 sps:$4 sm:$0xff]  }
 0x1b6   : > { %v1390_v62 = vadd.f32 %v1389_v10, %v1317_v17  ;;  %v1321_v27 = vadd.f32 %v1320_v19, %v5519_v53  ;;  %v1428_v30 = vmax.f32 %v1388_v15, 0.0  ;;  %2420 = vmatprep.subr.bf16.mxu0 %v4631_v13  ;;  %v1395_v32 = vpop.f32.mrf.mxu0  ;;  %v4644_v19 = vld [vmem:[#allocation7 + $0x1a8] ss:$16 sps:$4 sm:$0xff]  }
 0x1b7   : > { %v1322_v31 = vpop.f32.mrf.mxu1 }
 0x1b8   : > { %v1429_v34 = vmax.f32 %v1390_v62, 0.0  ;;  %v1323_v9 = vadd.f32 %v1322_v31, %v5514_v26  ;;  %v1394_v38 = vadd.f32 %v1393_v23, %v1321_v27  ;;  %v1397_v39 = vpop.f32.mrf.mxu0  ;;  %v5538_v46 = vpack.c.bf16 %v1428_v30, %v1424_v35  ;;  %v4647_v23 = vld [vmem:[#allocation7 + $0x2a8] ss:$16 sps:$4 sm:$0xff]   ;;  %v4655_v30 = vld [vmem:[#allocation7 + $0x28c] ss:$16 sps:$4 sm:$0xff]  }
 0x1b9   : > { %v1324_v28 = vpop.f32.mrf.mxu1  ;;  %2421 = vmatpush1.bf16.msra.mxu0 %v4629_v29  ;;  %v4652_v29 = vld [vmem:[#allocation7 + $0x18c] ss:$16 sps:$4 sm:$0xff]  }
 0x1ba   : > { %v5535_v41 = vpack.c.bf16 %v1429_v34, %v1425_v0  ;;  %v1325_v42 = vadd.f32 %v1324_v28, %v5519_v53  ;;  %v1396_v43 = vadd.f32 %v1395_v32, %v1323_v9  ;;  %2422 = vmatprep.subr.bf16.mxu0 %v4634_v33  ;;  %v1399_v48 = vpop.f32.mrf.mxu0  ;;  %v1432_v56 = vmax.f32 %v1394_v38, 0.0 }
 0x1bb   : > { %v1326_v47 = vpop.f32.mrf.mxu1 }
 0x1bc   : > { %v1327_v54 = vadd.f32 %v1326_v47, %v5514_v26  ;;  %v1398_v55 = vadd.f32 %v1397_v39, %v1325_v42  ;;  %2365 = vmatprep.mubr.bf16.mxu1 %v5535_v41  ;;  %v1403_v57 = vpop.f32.mrf.mxu0  ;;  %v1433_v58 = vmax.f32 %v1396_v43, 0.0  ;;  %v4650_v39 = vld [vmem:[#allocation7 + $0x188] ss:$16 sps:$4 sm:$0xff]   ;;  %v4661_v47 = vld [vmem:[#allocation7 + $0x26c] ss:$16 sps:$4 sm:$0xff]  }
 0x1bd   : > { %v1330_v25 = vpop.f32.mrf.mxu1  ;;  %2366 = vmatmul.mubr.bf16.vlgmr.msra.gmra.mxu1 %v5538_v46  ;;  %2423 = vmatpush2.bf16.msra.mxu0 %v4632_v49  ;;  %v4653_v42 = vld [vmem:[#allocation7 + $0x288] ss:$16 sps:$4 sm:$0xff]  }
 0x1be   : > { %v1436_v59 = vmax.f32 %v1398_v55, 0.0  ;;  %v1331_v60 = vadd.f32 %v1330_v25, %v5519_v53  ;;  %v1400_v61 = vadd.f32 %v1399_v48, %v1327_v54  ;;  %2480 = vmatpush1.bf16.msra.mxu1 %v4635_v44  ;;  %2424 = vmatprep.subr.bf16.mxu0 %v4640_v50  ;;  %v1405_v22 = vpop.f32.mrf.mxu0  ;;  %v4658_v44 = vld [vmem:[#allocation7 + $0x16c] ss:$16 sps:$4 sm:$0xff]  }
 0x1bf   : > { %v1332_v2 = vpop.f32.mrf.mxu1  ;;  %2481 = vmatprep.subr.bf16.mxu1 %v4643_v52 }
 0x1c0   : > { %v1437_v5 = vmax.f32 %v1400_v61, 0.0  ;;  %v1333_v7 = vadd.f32 %v1332_v2, %v5514_v26  ;;  %v5545_v8 = vpack.c.bf16 %v1436_v59, %v1432_v56  ;;  %v1404_v10 = vadd.f32 %v1403_v57, %v1331_v60  ;;  %v1407_v14 = vpop.f32.mrf.mxu0  ;;  %v4656_v59 = vld [vmem:[#allocation7 + $0x168] ss:$16 sps:$4 sm:$0xff]   ;;  %v4667_v2 = vld [vmem:[#allocation7 + $0x24c] ss:$16 sps:$4 sm:$0xff]  }
 0x1c1   : > { %v1334_v13 = vpop.f32.mrf.mxu1  ;;  %2425 = vmatpush2.bf16.msra.mxu0 %v4638_v63  ;;  %v4659_v60 = vld [vmem:[#allocation7 + $0x268] ss:$16 sps:$4 sm:$0xff]  }
 0x1c2   : > { %v5547_v15 = vpack.c.bf16 %v1437_v5, %v1433_v58  ;;  %v1335_v17 = vadd.f32 %v1334_v13, %v5519_v53  ;;  %v1406_v18 = vadd.f32 %v1405_v22, %v1333_v7  ;;  %2482 = vmatpush1.bf16.msra.mxu1 %v4641_v1  ;;  %2426 = vmatprep.subr.bf16.mxu0 %v4646_v3  ;;  %v1409_v27 = vpop.f32.mrf.mxu0  ;;  %v1440_v33 = vmax.f32 %v1404_v10, 0.0  ;;  %v4664_v1 = vld [vmem:[#allocation7 + $0x14c] ss:$16 sps:$4 sm:$0xff]   ;;  %v4662_v10 = vld [vmem:[#allocation7 + $0x148] ss:$16 sps:$4 sm:$0xff]  }
 0x1c3   : > { %v1336_v62 = vpop.f32.mrf.mxu1  ;;  %2483 = vmatprep.subr.bf16.mxu1 %v4649_v4  ;;  %v4665_v13 = vld [vmem:[#allocation7 + $0x248] ss:$16 sps:$4 sm:$0xff]  }
 0x1c4   : > { %v1337_v31 = vadd.f32 %v1336_v62, %v5514_v26  ;;  %v1408_v32 = vadd.f32 %v1407_v14, %v1335_v17  ;;  %2375 = vmatprep.mubr.bf16.mxu1 %v5547_v15  ;;  %v1413_v34 = vpop.f32.mrf.mxu0  ;;  %v1441_v9 = vmax.f32 %v1406_v18, 0.0  ;;  %v4670_v14 = vld [vmem:[#allocation7 + $0x12c] ss:$16 sps:$4 sm:$0xff]   ;;  %v4671_v62 = vld [vmem:[#allocation7 + $0x228] ss:$16 sps:$4 sm:$0xff]  }
 0x1c5   : > { %v1340_v0 = vpop.f32.mrf.mxu1  ;;  %2376 = vmatmul.mubr.bf16.gmra.mxu1 %v5545_v8  ;;  %2427 = vmatpush2.bf16.msra.mxu0 %v4644_v19  ;;  %v4673_v17 = vld [vmem:[#allocation7 + $0x22c] ss:$16 sps:$4 sm:$0xff]  }
 0x1c6   : > { %v1444_v35 = vmax.f32 %v1408_v32, 0.0  ;;  %v1341_v38 = vadd.f32 %v1340_v0, %v5519_v53  ;;  %v1410_v28 = vadd.f32 %v1409_v27, %v1337_v31  ;;  %2484 = vmatpush1.bf16.msra.mxu1 %v4647_v23  ;;  %2428 = vmatprep.subr.bf16.mxu0 %v4652_v29  ;;  %v1415_v49 = vpop.f32.mrf.mxu0  ;;  %v4668_v23 = vld [vmem:[#allocation7 + $0x128] ss:$16 sps:$4 sm:$0xff]   ;;  %v4676_v27 = vld [vmem:[#allocation7 + $0x10c] ss:$16 sps:$4 sm:$0xff]  }
 0x1c7   : > { %v1342_v43 = vpop.f32.mrf.mxu1  ;;  %2485 = vmatprep.subr.bf16.mxu1 %v4655_v30  ;;  %v4679_v29 = vld [vmem:[#allocation7 + $0x20c] ss:$16 sps:$4 sm:$0xff]   ;;  %v4674_v30 = vld [vmem:[#allocation7 + $0x108] ss:$16 sps:$4 sm:$0xff]  }
 0x1c8   : > { %v1445_v48 = vmax.f32 %v1410_v28, 0.0  ;;  %v1343_v50 = vadd.f32 %v1342_v43, %v5514_v26  ;;  %v5555_v52 = vpack.c.bf16 %v1444_v35, %v1440_v33  ;;  %v1414_v54 = vadd.f32 %v1413_v34, %v1341_v38  ;;  %v1417_v56 = vpop.f32.mrf.mxu0  ;;  %v4677_v31 = vld [vmem:[#allocation7 + $0x208] ss:$16 sps:$4 sm:$0xff]   ;;  %v4682_v32 = vld [vmem:[#allocation7 + $0x3ec] ss:$16 sps:$4 sm:$0xff]  }
 0x1c9   : > { %v1344_v55 = vpop.f32.mrf.mxu1  ;;  %2429 = vmatpush2.bf16.msra.mxu0 %v4650_v39  ;;  %v4706_v33 = vld [vmem:[#allocation9 + $0x74] ss:$8 sps:$4 sm:$0xff]   ;;  %v4680_v0 = vld [vmem:[#allocation7 + $0x3e8] ss:$16 sps:$4 sm:$0xff]   ;;  %v4709_v35 = vld [vmem:[#allocation9 + $0x64] ss:$8 sps:$4 sm:$0xff]  }
 0x1ca   : > { %v5557_v25 = vpack.c.bf16 %v1445_v48, %v1441_v9  ;;  %v1345_v57 = vadd.f32 %v1344_v55, %v5519_v53  ;;  %v1416_v58 = vadd.f32 %v1415_v49, %v1343_v50  ;;  %2486 = vmatpush1.bf16.msra.mxu1 %v4653_v42  ;;  %2430 = vmatprep.subr.bf16.mxu0 %v4658_v44  ;;  %v1419_v63 = vpop.f32.mrf.mxu0  ;;  %v1448_v4 = vmax.f32 %v1414_v54, 0.0  ;;  %v4685_v34 = vld [vmem:[#allocation7 + $0x3cc] ss:$16 sps:$4 sm:$0xff]   ;;  %v4704_v9 = vld [vmem:[#allocation9 + $0x70] ss:$8 sps:$4 sm:$0xff]  }
 0x1cb   : > { %v1346_v61 = vpop.f32.mrf.mxu1  ;;  %2487 = vmatprep.subr.bf16.mxu1 %v4661_v47  ;;  %v4683_v38 = vld [vmem:[#allocation7 + $0x3c8] ss:$16 sps:$4 sm:$0xff]   ;;  %v4712_v39 = vld [vmem:[#allocation9 + $0x54] ss:$8 sps:$4 sm:$0xff]   ;;  %v4715_v44 = vld [vmem:[#allocation9 + $0x44] ss:$8 sps:$4 sm:$0xff]  }
 0x1cc   : > { %v1347_v22 = vadd.f32 %v1346_v61, %v5514_v26  ;;  %v1418_v3 = vadd.f32 %v1417_v56, %v1345_v57  ;;  %2385 = vmatprep.mubr.bf16.mxu1 %v5557_v25  ;;  %v1449_v53 = vmax.f32 %v1416_v58, 0.0  ;;  %v4707_v28 = vld [vmem:[#allocation9 + $0x60] ss:$8 sps:$4 sm:$0xff]   ;;  %v4691_v43 = vld [vmem:[#allocation7 + $0x38c] ss:$16 sps:$4 sm:$0xff]  }
 0x1cd   : > { %2386 = vmatmul.mubr.bf16.gmra.mxu1 %v5555_v52  ;;  %2431 = vmatpush2.bf16.msra.mxu0 %v4656_v59  ;;  %v4686_v42 = vld [vmem:[#allocation7 + $0x3a8] ss:$16 sps:$4 sm:$0xff]   ;;  %v4718_v48 = vld [vmem:[#allocation9 + $0x34] ss:$8 sps:$4 sm:$0xff]   ;;  %v4721_v56 = vld [vmem:[#allocation9 + $0x24] ss:$8 sps:$4 sm:$0xff]  }
 0x1ce   : > { %v1452_v5 = vmax.f32 %v1418_v3, 0.0  ;;  %v1420_v7 = vadd.f32 %v1419_v63, %v1347_v22  ;;  %2488 = vmatpush1.bf16.msra.mxu1 %v4659_v60  ;;  %2432 = vmatprep.subr.bf16.mxu0 %v4664_v1  ;;  %v4710_v49 = vld [vmem:[#allocation9 + $0x50] ss:$8 sps:$4 sm:$0xff]   ;;  %v4713_v47 = vld [vmem:[#allocation9 + $0x40] ss:$8 sps:$4 sm:$0xff]  }
 0x1cf   : > { %2489 = vmatprep.subr.bf16.mxu1 %v4667_v2  ;;  %v4692_v50 = vld [vmem:[#allocation7 + $0x368] ss:$16 sps:$4 sm:$0xff]   ;;  %v4697_v54 = vld [vmem:[#allocation7 + $0x34c] ss:$16 sps:$4 sm:$0xff]  }
 0x1d0   : > { %v1453_v18 = vmax.f32 %v1420_v7, 0.0  ;;  %v5563_v19 = vpack.c.bf16 %v1452_v5, %v1448_v4  ;;  %v4716_v55 = vld [vmem:[#allocation9 + $0x30] ss:$8 sps:$4 sm:$0xff]   ;;  %v4719_v57 = vld [vmem:[#allocation9 + $0x20] ss:$8 sps:$4 sm:$0xff]  }
 0x1d1   : > { %2433 = vmatpush2.bf16.msra.mxu0 %v4662_v10  ;;  %v4724_v58 = vld [vmem:[#allocation9 + $0x14] ss:$8 sps:$4 sm:$0xff]   ;;  %v4698_v59 = vld [vmem:[#allocation7 + $0x328] ss:$16 sps:$4 sm:$0xff]   ;;  %v4727_v63 = vld [vmem:[#allocation9 + $0x4] ss:$8 sps:$4 sm:$0xff]  }
 0x1d2   : > { %v5565_v26 = vpack.c.bf16 %v1453_v18, %v1449_v53  ;;  %2490 = vmatpush1.bf16.msra.mxu1 %v4665_v13  ;;  %2434 = vmatprep.subr.bf16.mxu0 %v4670_v14  ;;  %v4703_v60 = vld [vmem:[#allocation7 + $0x30c] ss:$16 sps:$4 sm:$0xff]   ;;  %v4722_v61 = vld [vmem:[#allocation9 + $0x10] ss:$8 sps:$4 sm:$0xff]   ;;  %v4731_v3 = vld [vmem:[#allocation9 + $0xe0] ss:$8 sps:$4 sm:$0xff]  }
 0x1d3   : > { %2491 = vmatprep.subr.bf16.mxu1 %v4673_v17  ;;  %v4730_v1 = vld [vmem:[#allocation9 + $0xf4] ss:$8 sps:$4 sm:$0xff]   ;;  %v4728_v2 = vld [vmem:[#allocation9 + $0xf0] ss:$8 sps:$4 sm:$0xff]   ;;  %v4733_v22 = vld [vmem:[#allocation9 + $0xe4] ss:$8 sps:$4 sm:$0xff]  }
 0x1d4   : > { %2395 = vmatprep.mubr.bf16.mxu1 %v5565_v26  ;;  %v4734_v4 = vld [vmem:[#allocation9 + $0xd0] ss:$8 sps:$4 sm:$0xff]   ;;  %v4739_v53 = vld [vmem:[#allocation9 + $0xc4] ss:$8 sps:$4 sm:$0xff]   ;;  %v4737_v5 = vld [vmem:[#allocation9 + $0xc0] ss:$8 sps:$4 sm:$0xff]  }
 0x1d5   : > { %2396 = vmatmul.mubr.bf16.gmra.mxu1 %v5563_v19  ;;  %2435 = vmatpush2.bf16.msra.mxu0 %v4668_v23  ;;  %v4742_v7 = vld [vmem:[#allocation9 + $0xb4] ss:$8 sps:$4 sm:$0xff]   ;;  %v4745_v13 = vld [vmem:[#allocation9 + $0xa4] ss:$8 sps:$4 sm:$0xff]   ;;  %v4758_v23 = vld [vmem:[#allocation9 + $0x150] ss:$8 sps:$4 sm:$0xff]  }
 0x1d6   : > { %2492 = vmatpush1.bf16.msra.mxu1 %v4671_v62  ;;  %2511 = vmatprep.mubr.bf16.mxu1 %v5535_v41  ;;  %v4688_v41 = vld [vmem:[#allocation7 + $0x3ac] ss:$16 sps:$4 sm:$0xff]   ;;  %v4746_v62 = vld [vmem:[#allocation9 + $0x90] ss:$8 sps:$4 sm:$0xff]  }
 0x1d7   : > { %2436 = vmatprep.subr.bf16.mxu0 %v4676_v27  ;;  %2493 = vmatprep.subr.bf16.mxu1 %v4679_v29  ;;  %v4754_v10 = vld [vmem:[#allocation9 + $0x174] ss:$8 sps:$4 sm:$0xff]   ;;  %v4757_v14 = vld [vmem:[#allocation9 + $0x164] ss:$8 sps:$4 sm:$0xff]   ;;  %v4761_v29 = vld [vmem:[#allocation9 + $0x140] ss:$8 sps:$4 sm:$0xff]  }
 0x1d8   : > { %v4748_v17 = vld [vmem:[#allocation9 + $0x94] ss:$8 sps:$4 sm:$0xff]   ;;  %v4751_v27 = vld [vmem:[#allocation9 + $0x84] ss:$8 sps:$4 sm:$0xff]  }
 0x1d9   : > { %2437 = vmatpush2.bf16.msra.mxu0 %v4674_v30  ;;  %v4760_v18 = vld [vmem:[#allocation9 + $0x154] ss:$8 sps:$4 sm:$0xff]  }
 0x1da   : > { %2494 = vmatpush1.bf16.msra.mxu1 %v4677_v31  ;;  %2996 = vmatprep.subr.bf16.mxu0 %v4706_v33  ;;  %v4766_v30 = vld [vmem:[#allocation9 + $0x134] ss:$8 sps:$4 sm:$0xff]   ;;  %v4764_v31 = vld [vmem:[#allocation9 + $0x130] ss:$8 sps:$4 sm:$0xff]   ;;  %v4767_v33 = vld [vmem:[#allocation9 + $0x120] ss:$8 sps:$4 sm:$0xff]  }
 0x1db   : > { %2495 = vmatprep.subr.bf16.mxu1 %v4682_v32  ;;  %v4769_v32 = vld [vmem:[#allocation9 + $0x124] ss:$8 sps:$4 sm:$0xff]  }
 0x1dc   : > { %2439 = vmatmul.mubr.bf16.vlgmr.msra.gmra.mxu0 %v5484_v51  ;;  %v4689_v51 = vld [vmem:[#allocation7 + $0x388] ss:$16 sps:$4 sm:$0xff]  }
 0x1dd   : > { %2448 = vmatprep.mubr.bf16.mxu0 %v5492_v12  ;;  %2997 = vmatpush1.bf16.msra.mxu0 %v4704_v9  ;;  %v4694_v12 = vld [vmem:[#allocation7 + $0x36c] ss:$16 sps:$4 sm:$0xff]   ;;  %v4773_v9 = vld [vmem:[#allocation9 + $0x100] ss:$8 sps:$4 sm:$0xff]  }
 0x1de   : > { %2496 = vmatpush2.bf16.msra.mxu1 %v4680_v0  ;;  %2998 = vmatprep.subr.bf16.mxu0 %v4709_v35  ;;  %v4772_v0 = vld [vmem:[#allocation9 + $0x114] ss:$8 sps:$4 sm:$0xff]  }
 0x1df   : > { %2497 = vmatprep.subr.bf16.mxu1 %v4685_v34  ;;  %v4770_v34 = vld [vmem:[#allocation9 + $0x110] ss:$8 sps:$4 sm:$0xff]   ;;  %v4778_v35 = vld [vmem:[#allocation9 + $0x1f4] ss:$8 sps:$4 sm:$0xff]  }
 0x1e1   : > { %2999 = vmatpush1.bf16.msra.mxu0 %v4707_v28  ;;  %v4779_v28 = vld [vmem:[#allocation9 + $0x1e0] ss:$8 sps:$4 sm:$0xff]  }
 0x1e2   : > { %2498 = vmatpush2.bf16.msra.mxu1 %v4683_v38  ;;  %3000 = vmatprep.subr.bf16.mxu0 %v4712_v39  ;;  %v4776_v38 = vld [vmem:[#allocation9 + $0x1f0] ss:$8 sps:$4 sm:$0xff]   ;;  %v4784_v39 = vld [vmem:[#allocation9 + $0x1d4] ss:$8 sps:$4 sm:$0xff]  }
 0x1e3   : > { %2499 = vmatprep.subr.bf16.mxu1 %v4688_v41  ;;  %v4781_v41 = vld [vmem:[#allocation9 + $0x1e4] ss:$8 sps:$4 sm:$0xff]  }
 0x1e4   : > { %2449 = vmatmul.mubr.bf16.gmra.mxu0 %v5494_v16  ;;  %v4695_v16 = vld [vmem:[#allocation7 + $0x348] ss:$16 sps:$4 sm:$0xff]  }
 0x1e5   : > { %2458 = vmatprep.mubr.bf16.mxu0 %v5505_v24  ;;  %3001 = vmatpush1.bf16.msra.mxu0 %v4710_v49  ;;  %v4700_v24 = vld [vmem:[#allocation7 + $0x32c] ss:$16 sps:$4 sm:$0xff]   ;;  %v4785_v49 = vld [vmem:[#allocation9 + $0x1c0] ss:$8 sps:$4 sm:$0xff]  }
 0x1e6   : > { %2500 = vmatpush2.bf16.msra.mxu1 %v4686_v42  ;;  %3002 = vmatprep.subr.bf16.mxu0 %v4715_v44  ;;  %v4782_v42 = vld [vmem:[#allocation9 + $0x1d0] ss:$8 sps:$4 sm:$0xff]   ;;  %v4790_v44 = vld [vmem:[#allocation9 + $0x1b4] ss:$8 sps:$4 sm:$0xff]  }
 0x1e7   : > { %2501 = vmatprep.subr.bf16.mxu1 %v4691_v43  ;;  %v4787_v43 = vld [vmem:[#allocation9 + $0x1c4] ss:$8 sps:$4 sm:$0xff]  }
 0x1e9   : > { %3003 = vmatpush1.bf16.msra.mxu0 %v4713_v47  ;;  %v4791_v47 = vld [vmem:[#allocation9 + $0x1a0] ss:$8 sps:$4 sm:$0xff]  }
 0x1ea   : > { %2502 = vmatpush2.bf16.msra.mxu1 %v4689_v51  ;;  %3004 = vmatprep.subr.bf16.mxu0 %v4718_v48  ;;  %v4788_v51 = vld [vmem:[#allocation9 + $0x1b0] ss:$8 sps:$4 sm:$0xff]   ;;  %v4796_v48 = vld [vmem:[#allocation9 + $0x194] ss:$8 sps:$4 sm:$0xff]  }
 0x1eb   : > { %2503 = vmatprep.subr.bf16.mxu1 %v4694_v12  ;;  %v4793_v12 = vld [vmem:[#allocation9 + $0x1a4] ss:$8 sps:$4 sm:$0xff]  }
 0x1ec   : > { %2459 = vmatmul.mubr.bf16.gmra.mxu0 %v5507_v45  ;;  %v4701_v45 = vld [vmem:[#allocation7 + $0x308] ss:$16 sps:$4 sm:$0xff]  }
 0x1ed   : > { %2468 = vmatprep.mubr.bf16.mxu0 %v5525_v6  ;;  %3005 = vmatpush1.bf16.msra.mxu0 %v4716_v55  ;;  %v4725_v6 = vld [vmem:[#allocation9] ss:$8 sps:$4 sm:$0xff]  }
 0x1ee   : > { %2504 = vmatpush2.bf16.msra.mxu1 %v4692_v50  ;;  %3006 = vmatprep.subr.bf16.mxu0 %v4721_v56  ;;  %v4794_v50 = vld [vmem:[#allocation9 + $0x190] ss:$8 sps:$4 sm:$0xff]   ;;  %v4797_v55 = vld [vmem:[#allocation9 + $0x180] ss:$8 sps:$4 sm:$0xff]  }
 0x1ef   : > { %2505 = vmatprep.subr.bf16.mxu1 %v4697_v54  ;;  %v4799_v54 = vld [vmem:[#allocation9 + $0x184] ss:$8 sps:$4 sm:$0xff]  }
 0x1f1   : > { %3007 = vmatpush1.bf16.msra.mxu0 %v4719_v57 }
 0x1f2   : > { %2506 = vmatpush2.bf16.msra.mxu1 %v4695_v16  ;;  %3008 = vmatprep.subr.bf16.mxu0 %v4724_v58 }
 0x1f3   : > { %2507 = vmatprep.subr.bf16.mxu1 %v4700_v24 }
 0x1f4   : > { %2469 = vmatmul.mubr.bf16.gmra.mxu0 %v5527_v11  ;;  %v4736_v11 = vld [vmem:[#allocation9 + $0xd4] ss:$8 sps:$4 sm:$0xff]  }
 0x1f5   : > { %3009 = vmatpush1.bf16.msra.mxu0 %v4722_v61 }
 0x1f6   : > { %2508 = vmatpush2.bf16.msra.mxu1 %v4698_v59  ;;  %3010 = vmatprep.subr.bf16.mxu0 %v4727_v63  ;;  %v5587_v63 = vld [vmem:[%s5694_s4] sm:$0xf] }
 0x1f7   : > { %2509 = vmatprep.subr.bf16.mxu1 %v4703_v60 }
 0x1f9   : > { %3011 = vmatpush1.bf16.msra.mxu0 %v4725_v6  ;;  %v5591_v6 = vrot.slane %v5587_v63, %v5458_v20 }
 0x1fa   : > { %2510 = vmatpush2.bf16.msra.mxu1 %v4701_v45  ;;  %3012 = vmatprep.subr.bf16.mxu0 %v4730_v1  ;;  %v5595_v1 = vrot.slane %v5587_v63, %v5461_v21 }
 0x1fb   : > { %3069 = vmatprep.subr.bf16.mxu1 %v4754_v10 }
 0x1fd   : > { %2512 = vmatmul.mubr.bf16.vlgmr.msra.gmra.mxu1 %v5538_v46  ;;  %3013 = vmatpush2.bf16.msra.mxu0 %v4728_v2  ;;  %v4752_v46 = vld [vmem:[#allocation9 + $0x170] ss:$8 sps:$4 sm:$0xff]  }
 0x1fe   : > { %2521 = vmatprep.mubr.bf16.mxu1 %v5547_v15  ;;  %3014 = vmatprep.subr.bf16.mxu0 %v4733_v22  ;;  %v4740_v15 = vld [vmem:[#allocation9 + $0xb0] ss:$8 sps:$4 sm:$0xff]  }
 0x1ff   : > { %3070 = vmatpush1.bf16.msra.mxu1 %v4752_v46 }
 0x200   : > { %3071 = vmatprep.subr.bf16.mxu1 %v4757_v14 }
 0x201   : > { %3015 = vmatpush2.bf16.msra.mxu0 %v4731_v3 }
 0x202   : > { %3016 = vmatprep.subr.bf16.mxu0 %v4736_v11 }
 0x205   : > { %2522 = vmatmul.mubr.bf16.gmra.mxu1 %v5545_v8  ;;  %3017 = vmatpush2.bf16.msra.mxu0 %v4734_v4  ;;  %v4755_v8 = vld [vmem:[#allocation9 + $0x160] ss:$8 sps:$4 sm:$0xff]  }
 0x206   : > { %2531 = vmatprep.mubr.bf16.mxu1 %v5557_v25  ;;  %3018 = vmatprep.subr.bf16.mxu0 %v4739_v53  ;;  %v4743_v25 = vld [vmem:[#allocation9 + $0xa0] ss:$8 sps:$4 sm:$0xff]  }
 0x207   : > { %3072 = vmatpush1.bf16.msra.mxu1 %v4755_v8 }
 0x208   : > { %3073 = vmatprep.subr.bf16.mxu1 %v4760_v18 }
 0x209   : > { %3019 = vmatpush2.bf16.msra.mxu0 %v4737_v5 }
 0x20a   : > { %3020 = vmatprep.subr.bf16.mxu0 %v4742_v7 }
 0x20b   : > { %3074 = vmatpush1.bf16.msra.mxu1 %v4758_v23 }
 0x20d   : > { %2532 = vmatmul.mubr.bf16.gmra.mxu1 %v5555_v52  ;;  %3021 = vmatpush2.bf16.msra.mxu0 %v4740_v15  ;;  %v4763_v52 = vld [vmem:[#allocation9 + $0x144] ss:$8 sps:$4 sm:$0xff]  }
 0x20e   : > { %2541 = vmatprep.mubr.bf16.mxu1 %v5565_v26  ;;  %3022 = vmatprep.subr.bf16.mxu0 %v4745_v13  ;;  %v4749_v26 = vld [vmem:[#allocation9 + $0x80] ss:$8 sps:$4 sm:$0xff]  }
 0x20f   : > { %3075 = vmatprep.subr.bf16.mxu1 %v4763_v52 }
 0x210   : > { %3076 = vmatpush1.bf16.msra.mxu1 %v4761_v29 }
 0x211   : > { %3023 = vmatpush2.bf16.msra.mxu0 %v4743_v25  ;;  %3077 = vmatprep.subr.bf16.mxu1 %v4766_v30 }
 0x212   : > { %3024 = vmatprep.subr.bf16.mxu0 %v4748_v17 }
 0x214   : > { %3078 = vmatpush1.bf16.msra.mxu1 %v4764_v31 }
 0x215   : > { %2542 = vmatmul.mubr.bf16.gmra.mxu1 %v5563_v19  ;;  %3025 = vmatpush2.bf16.msra.mxu0 %v4746_v62  ;;  %v4775_v19 = vld [vmem:[#allocation9 + $0x104] ss:$8 sps:$4 sm:$0xff]  }
 0x216   : > { %3026 = vmatprep.subr.bf16.mxu0 %v4751_v27  ;;  %3079 = vmatprep.subr.bf16.mxu1 %v4769_v32 }
 0x218   : > { %3080 = vmatpush1.bf16.msra.mxu1 %v4767_v33 }
 0x219   : > { %3027 = vmatpush2.bf16.msra.mxu0 %v4749_v26  ;;  %3081 = vmatprep.subr.bf16.mxu1 %v4772_v0 }
 0x21c   : > { %3082 = vmatpush1.bf16.msra.mxu1 %v4770_v34 }
 0x21d   : > { %3083 = vmatprep.subr.bf16.mxu1 %v4775_v19 }
 0x220   : > { %3084 = vmatpush1.bf16.msra.mxu1 %v4773_v9 }
 0x221   : > { %3085 = vmatprep.subr.bf16.mxu1 %v4778_v35 }
 0x224   : > { %3086 = vmatpush2.bf16.msra.mxu1 %v4776_v38 }
 0x225   : > { %3087 = vmatprep.subr.bf16.mxu1 %v4781_v41 }
 0x228   : > { %3088 = vmatpush2.bf16.msra.mxu1 %v4779_v28 }
 0x229   : > { %3089 = vmatprep.subr.bf16.mxu1 %v4784_v39 }
 0x22c   : > { %3090 = vmatpush2.bf16.msra.mxu1 %v4782_v42 }
 0x22d   : > { %3091 = vmatprep.subr.bf16.mxu1 %v4787_v43 }
 0x230   : > { %3092 = vmatpush2.bf16.msra.mxu1 %v4785_v49 }
 0x231   : > { %3093 = vmatprep.subr.bf16.mxu1 %v4790_v44 }
 0x234   : > { %3094 = vmatpush2.bf16.msra.mxu1 %v4788_v51 }
 0x235   : > { %3095 = vmatprep.subr.bf16.mxu1 %v4793_v12 }
 0x238   : > { %3096 = vmatpush2.bf16.msra.mxu1 %v4791_v47 }
 0x239   : > { %3097 = vmatprep.subr.bf16.mxu1 %v4796_v48 }
 0x23c   : > { %3098 = vmatpush2.bf16.msra.mxu1 %v4794_v50 }
 0x23d   : > { %3099 = vmatprep.subr.bf16.mxu1 %v4799_v54 }
 0x240   : > { %3100 = vmatpush2.bf16.msra.mxu1 %v4797_v55 }
 0x25c   : > { %v2294_v56 = vpop.f32.mrf.mxu0 }
 0x25d   : > { %v2295_v53 = vadd.f32 %v2294_v56, %v5595_v1 }
 0x25e   : > { %v2296_v16 = vpop.f32.mrf.mxu0 }
 0x25f   : > { %v2297_v11 = vadd.f32 %v2296_v16, %v5591_v6 }
 0x260   : > { %v2298_v24 = vpop.f32.mrf.mxu0 }
 0x261   : > { %v2299_v4 = vadd.f32 %v2298_v24, %v5595_v1 }
 0x262   : > { %v2300_v57 = vpop.f32.mrf.mxu0 }
 0x263   : > { %v2301_v7 = vadd.f32 %v2300_v57, %v5591_v6 }
 0x264   : > { %v2304_v58 = vpop.f32.mrf.mxu0 }
 0x265   : > { %v2305_v31 = vadd.f32 %v2304_v58, %v5595_v1 }
 0x266   : > { %v2306_v59 = vpop.f32.mrf.mxu0 }
 0x267   : > { %v2307_v29 = vadd.f32 %v2306_v59, %v5591_v6 }
 0x268   : > { %v2308_v60 = vpop.f32.mrf.mxu0 }
 0x269   : > { %v2309_v26 = vadd.f32 %v2308_v60, %v5595_v1 }
 0x26a   : > { %v2310_v61 = vpop.f32.mrf.mxu0 }
 0x26b   : > { %v2311_v0 = vadd.f32 %v2310_v61, %v5591_v6 }
 0x26c   : > { %v2314_v45 = vpop.f32.mrf.mxu0 }
 0x26d   : > { %v2315_v50 = vadd.f32 %v2314_v45, %v5595_v1 }
 0x26e   : > { %v2316_v22 = vpop.f32.mrf.mxu0 }
 0x26f   : > { %v2317_v12 = vadd.f32 %v2316_v22, %v5591_v6 }
 0x270   : > { %v2318_v15 = vpop.f32.mrf.mxu0 }
 0x271   : > { %v2319_v47 = vadd.f32 %v2318_v15, %v5595_v1 }
 0x272   : > { %v2320_v62 = vpop.f32.mrf.mxu0 }
 0x273   : > { %v2321_v56 = vadd.f32 %v2320_v62, %v5591_v6 }
 0x274   : > { %v2324_v9 = vpop.f32.mrf.mxu0 }
 0x276   : > { %v2326_v49 = vpop.f32.mrf.mxu0 }
 0x277   : > { %v2327_v45 = vadd.f32 %v2326_v49, %v5591_v6 }
 0x278   : > { %v2328_v57 = vpop.f32.mrf.mxu0 }
 0x27d   : > { %v2367_v2 = vpop.f32.mrf.mxu1 }
 0x27e   : > { %v2368_v13 = vadd.f32 %v2367_v2, %v2295_v53 }
 0x27f   : > { %v2369_v3 = vpop.f32.mrf.mxu1 }
 0x280   : > { %v2370_v10 = vadd.f32 %v2369_v3, %v2297_v11  ;;  %v2552_v27 = vmax.f32 %v2368_v13, 0.0  ;;  %v2330_v11 = vpop.f32.mrf.mxu0 }
 0x281   : > { %v2371_v5 = vpop.f32.mrf.mxu1  ;;  %v2331_v13 = vadd.f32 %v2330_v11, %v5591_v6 }
 0x282   : > { %v2372_v46 = vadd.f32 %v2371_v5, %v2299_v4  ;;  %v2553_v18 = vmax.f32 %v2370_v10, 0.0  ;;  %v2329_v5 = vadd.f32 %v2328_v57, %v5595_v1  ;;  %v2325_v10 = vadd.f32 %v2324_v9, %v5595_v1 }
 0x283   : > { %v2373_v14 = vpop.f32.mrf.mxu1  ;;  %v5616_v9 = vrot.slane %v5587_v63, %v644_v36 }
 0x284   : > { %v2374_v8 = vadd.f32 %v2373_v14, %v2301_v7  ;;  %v2556_v25 = vmax.f32 %v2372_v46, 0.0 }
 0x285   : > { %v2377_v17 = vpop.f32.mrf.mxu1 }
 0x286   : > { %v2557_v23 = vmax.f32 %v2374_v8, 0.0  ;;  %v2584_v32 = vpack.c.bf16 %v2556_v25, %v2552_v27  ;;  %v2378_v35 = vadd.f32 %v2377_v17, %v2305_v31 }
 0x287   : > { %v2379_v52 = vpop.f32.mrf.mxu1 }
 0x288   : > { %v2585_v30 = vpack.c.bf16 %v2557_v23, %v2553_v18  ;;  %v2380_v34 = vadd.f32 %v2379_v52, %v2307_v29  ;;  %v2560_v44 = vmax.f32 %v2378_v35, 0.0  ;;  %v5621_v35 = vrot.slane %v5587_v63, %v640_v40 }
 0x289   : > { %v2381_v33 = vpop.f32.mrf.mxu1 }
 0x28a   : > { %v2382_v19 = vadd.f32 %v2381_v33, %v2309_v26  ;;  %3028 = vmatprep.mubr.bf16.mxu0 %v2585_v30  ;;  %v2561_v42 = vmax.f32 %v2380_v34, 0.0 }
 0x28b   : > { %v2383_v38 = vpop.f32.mrf.mxu1  ;;  %3029 = vmatmul.mubr.bf16.vlgmr.msra.gmra.mxu0 %v2584_v32 }
 0x28c   : > { %v2384_v41 = vadd.f32 %v2383_v38, %v2311_v0  ;;  %v2564_v28 = vmax.f32 %v2382_v19, 0.0 }
 0x28d   : > { %v2387_v39 = vpop.f32.mrf.mxu1 }
 0x28e   : > { %v2565_v43 = vmax.f32 %v2384_v41, 0.0  ;;  %v2588_v54 = vpack.c.bf16 %v2564_v28, %v2560_v44  ;;  %v2388_v58 = vadd.f32 %v2387_v39, %v2315_v50 }
 0x28f   : > { %v2389_v51 = vpop.f32.mrf.mxu1 }
 0x290   : > { %v2589_v48 = vpack.c.bf16 %v2565_v43, %v2561_v42  ;;  %v2390_v16 = vadd.f32 %v2389_v51, %v2317_v12  ;;  %v2568_v4 = vmax.f32 %v2388_v58, 0.0 }
 0x291   : > { %v2391_v55 = vpop.f32.mrf.mxu1 }
 0x292   : > { %v2392_v24 = vadd.f32 %v2391_v55, %v2319_v47  ;;  %3038 = vmatprep.mubr.bf16.mxu0 %v2589_v48  ;;  %v2569_v22 = vmax.f32 %v2390_v16, 0.0 }
 0x293   : > { %v2393_v59 = vpop.f32.mrf.mxu1  ;;  %3039 = vmatmul.mubr.bf16.gmra.mxu0 %v2588_v54 }
 0x294   : > { %v2394_v60 = vadd.f32 %v2393_v59, %v2321_v56  ;;  %v2572_v61 = vmax.f32 %v2392_v24, 0.0 }
 0x295   : > { %v2397_v2 = vpop.f32.mrf.mxu1 }
 0x296   : > { %v2573_v3 = vmax.f32 %v2394_v60, 0.0  ;;  %v2592_v46 = vpack.c.bf16 %v2572_v61, %v2568_v4  ;;  %v2398_v25 = vadd.f32 %v2397_v2, %v2325_v10 }
 0x297   : > { %v2399_v53 = vpop.f32.mrf.mxu1 }
 0x298   : > { %v2593_v7 = vpack.c.bf16 %v2573_v3, %v2569_v22  ;;  %v2400_v14 = vadd.f32 %v2399_v53, %v2327_v45  ;;  %v2576_v29 = vmax.f32 %v2398_v25, 0.0 }
 0x299   : > { %v2401_v15 = vpop.f32.mrf.mxu1 }
 0x29a   : > { %v2402_v8 = vadd.f32 %v2401_v15, %v2329_v5  ;;  %3048 = vmatprep.mubr.bf16.mxu0 %v2593_v7  ;;  %v2577_v27 = vmax.f32 %v2400_v14, 0.0 }
 0x29b   : > { %v2403_v17 = vpop.f32.mrf.mxu1  ;;  %3049 = vmatmul.mubr.bf16.gmra.mxu0 %v2592_v46 }
 0x29c   : > { %v2404_v18 = vadd.f32 %v2403_v17, %v2331_v13  ;;  %v2580_v23 = vmax.f32 %v2402_v8, 0.0  ;;  %v2440_v62 = vpop.f32.mrf.mxu0 }
 0x29d   : > { %v2441_v43 = vadd.f32 %v2440_v62, %v5621_v35 }
 0x29e   : > { %v2581_v52 = vmax.f32 %v2404_v18, 0.0  ;;  %v2442_v26 = vpop.f32.mrf.mxu0  ;;  %v2596_v31 = vpack.c.bf16 %v2580_v23, %v2576_v29 }
 0x29f   : > { %v2443_v39 = vadd.f32 %v2442_v26, %v5616_v9 }
 0x2a0   : > { %v2597_v30 = vpack.c.bf16 %v2581_v52, %v2577_v27  ;;  %v2444_v1 = vpop.f32.mrf.mxu0 }
 0x2a1   : > { %v2445_v42 = vadd.f32 %v2444_v1, %v5621_v35 }
 0x2a2   : > { %3058 = vmatprep.mubr.bf16.mxu0 %v2597_v30  ;;  %v2446_v32 = vpop.f32.mrf.mxu0 }
 0x2a3   : > { %3059 = vmatmul.mubr.bf16.gmra.mxu0 %v2596_v31  ;;  %v2447_v44 = vadd.f32 %v2446_v32, %v5616_v9 }
 0x2a4   : > { %v2450_v6 = vpop.f32.mrf.mxu0 }
 0x2a5   : > { %v2451_v59 = vadd.f32 %v2450_v6, %v5621_v35 }
 0x2a6   : > { %v2452_v33 = vpop.f32.mrf.mxu0 }
 0x2a7   : > { %v2453_v24 = vadd.f32 %v2452_v33, %v5616_v9 }
 0x2a8   : > { %v2454_v0 = vpop.f32.mrf.mxu0 }
 0x2a9   : > { %v2455_v57 = vadd.f32 %v2454_v0, %v5621_v35 }
 0x2aa   : > { %v2456_v34 = vpop.f32.mrf.mxu0 }
 0x2ab   : > { %v2457_v2 = vadd.f32 %v2456_v34, %v5616_v9 }
 0x2ac   : > { %v2460_v19 = vpop.f32.mrf.mxu0 }
 0x2ad   : > { %v2461_v18 = vadd.f32 %v2460_v19, %v5621_v35  ;;  %v4802_v19 = vld [vmem:[#allocation10 + $0x74] ss:$8 sps:$4 sm:$0xff]  }
 0x2ae   : > { %v2462_v41 = vpop.f32.mrf.mxu0  ;;  %3370 = vmatprep.subr.bf16.mxu0 %v4802_v19 }
 0x2af   : > { %v2463_v8 = vadd.f32 %v2462_v41, %v5616_v9 }
 0x2b0   : > { %v2464_v12 = vpop.f32.mrf.mxu0 }
 0x2b1   : > { %v2465_v25 = vadd.f32 %v2464_v12, %v5621_v35 }
 0x2b2   : > { %v2466_v55 = vpop.f32.mrf.mxu0 }
 0x2b3   : > { %v2467_v27 = vadd.f32 %v2466_v55, %v5616_v9 }
 0x2b4   : > { %v2470_v11 = vpop.f32.mrf.mxu0 }
 0x2b6   : > { %v2472_v15 = vpop.f32.mrf.mxu0 }
 0x2b8   : > { %v2474_v26 = vpop.f32.mrf.mxu0 }
 0x2ba   : > { %v2476_v34 = vpop.f32.mrf.mxu0 }
 0x2bd   : > { %v2513_v38 = vpop.f32.mrf.mxu1 }
 0x2be   : > { %v2514_v47 = vadd.f32 %v2513_v38, %v2441_v43  ;;  %v4800_v43 = vld [vmem:[#allocation10 + $0x70] ss:$8 sps:$4 sm:$0xff]  }
 0x2bf   : > { %v2515_v28 = vpop.f32.mrf.mxu1  ;;  %3371 = vmatpush1.bf16.msra.mxu0 %v4800_v43 }
 0x2c0   : > { %v2516_v51 = vadd.f32 %v2515_v28, %v2443_v39  ;;  %v2554_v56 = vmax.f32 %v2514_v47, 0.0  ;;  %v2473_v28 = vadd.f32 %v2472_v15, %v5616_v9  ;;  %v2475_v39 = vadd.f32 %v2474_v26, %v5621_v35  ;;  %v4830_v15 = vld [vmem:[#allocation10 + $0xd0] ss:$8 sps:$4 sm:$0xff]  }
 0x2c1   : > { %v2517_v49 = vpop.f32.mrf.mxu1  ;;  %v4849_v26 = vld [vmem:[#allocation12 + $0x38] sm:$0xff]  }
 0x2c2   : > { %v2518_v36 = vadd.f32 %v2517_v49, %v2445_v42  ;;  %v2555_v50 = vmax.f32 %v2516_v51, 0.0  ;;  %v2471_v49 = vadd.f32 %v2470_v11, %v5621_v35  ;;  %v4818_v11 = vld [vmem:[#allocation10 + $0x10] ss:$8 sps:$4 sm:$0xff]  }
 0x2c3   : > { %v2519_v37 = vpop.f32.mrf.mxu1 }
 0x2c4   : > { %v2520_v48 = vadd.f32 %v2519_v37, %v2447_v44  ;;  %v2558_v40 = vmax.f32 %v2518_v36, 0.0  ;;  %v2477_v36 = vadd.f32 %v2476_v34, %v5616_v9  ;;  %v4857_v34 = vld [vmem:[#allocation12 + $0x18] sm:$0xff]  }
 0x2c5   : > { %v2523_v63 = vpop.f32.mrf.mxu1 }
 0x2c6   : > { %v2559_v54 = vmax.f32 %v2520_v48, 0.0  ;;  %v2586_v60 = vpack.c.bf16 %v2558_v40, %v2554_v56  ;;  %v2524_v4 = vadd.f32 %v2523_v63, %v2451_v59  ;;  %v4805_v40 = vld [vmem:[#allocation10 + $0x64] ss:$8 sps:$4 sm:$0xff]   ;;  %v4809_v59 = vld [vmem:[#allocation10 + $0x40] ss:$8 sps:$4 sm:$0xff]  }
 0x2c7   : > { %v2525_v16 = vpop.f32.mrf.mxu1  ;;  %3372 = vmatprep.subr.bf16.mxu0 %v4805_v40 }
 0x2c8   : > { %v2587_v58 = vpack.c.bf16 %v2559_v54, %v2555_v50  ;;  %v2526_v22 = vadd.f32 %v2525_v16, %v2453_v24  ;;  %v2562_v13 = vmax.f32 %v2524_v4, 0.0  ;;  %v4803_v50 = vld [vmem:[#allocation10 + $0x60] ss:$8 sps:$4 sm:$0xff]   ;;  %v4808_v16 = vld [vmem:[#allocation10 + $0x54] ss:$8 sps:$4 sm:$0xff]  }
 0x2c9   : > { %v2527_v61 = vpop.f32.mrf.mxu1  ;;  %3373 = vmatpush1.bf16.msra.mxu0 %v4803_v50  ;;  %v4823_v4 = vld [vmem:[#allocation10 + $0x4] ss:$8 sps:$4 sm:$0xff]  }
 0x2ca   : > { %v2528_v3 = vadd.f32 %v2527_v61, %v2455_v57  ;;  %3101 = vmatprep.mubr.bf16.mxu1 %v2587_v58  ;;  %v2563_v10 = vmax.f32 %v2526_v22, 0.0  ;;  %v4806_v57 = vld [vmem:[#allocation10 + $0x50] ss:$8 sps:$4 sm:$0xff]   ;;  %3374 = vmatprep.subr.bf16.mxu0 %v4808_v16  ;;  %v4811_v58 = vld [vmem:[#allocation10 + $0x44] ss:$8 sps:$4 sm:$0xff]  }
 0x2cb   : > { %v2529_v53 = vpop.f32.mrf.mxu1  ;;  %3102 = vmatmul.mubr.bf16.vlgmr.msra.gmra.mxu1 %v2586_v60  ;;  %v4814_v60 = vld [vmem:[#allocation10 + $0x34] ss:$8 sps:$4 sm:$0xff]   ;;  %v4812_v61 = vld [vmem:[#allocation10 + $0x30] ss:$8 sps:$4 sm:$0xff]   ;;  %v4817_v22 = vld [vmem:[#allocation10 + $0x24] ss:$8 sps:$4 sm:$0xff]  }
 0x2cc   : > { %v2530_v45 = vadd.f32 %v2529_v53, %v2457_v2  ;;  %v2566_v5 = vmax.f32 %v2528_v3, 0.0  ;;  %v4815_v2 = vld [vmem:[#allocation10 + $0x20] ss:$8 sps:$4 sm:$0xff]   ;;  %v4820_v3 = vld [vmem:[#allocation10 + $0x14] ss:$8 sps:$4 sm:$0xff]  }
 0x2cd   : > { %v2533_v7 = vpop.f32.mrf.mxu1  ;;  %3375 = vmatpush1.bf16.msra.mxu0 %v4806_v57  ;;  %v4821_v53 = vld [vmem:[#allocation10] ss:$8 sps:$4 sm:$0xff]  }
 0x2ce   : > { %v2567_v46 = vmax.f32 %v2530_v45, 0.0  ;;  %v2590_v23 = vpack.c.bf16 %v2566_v5, %v2562_v13  ;;  %v2534_v30 = vadd.f32 %v2533_v7, %v2461_v18  ;;  %3376 = vmatprep.subr.bf16.mxu0 %v4811_v58  ;;  %v4826_v45 = vld [vmem:[#allocation10 + $0xf4] ss:$8 sps:$4 sm:$0xff]   ;;  %v4824_v5 = vld [vmem:[#allocation10 + $0xf0] ss:$8 sps:$4 sm:$0xff]  }
 0x2cf   : > { %v2535_v14 = vpop.f32.mrf.mxu1  ;;  %v4829_v7 = vld [vmem:[#allocation10 + $0xe4] ss:$8 sps:$4 sm:$0xff]   ;;  %v4839_v18 = vld [vmem:[#allocation10 + $0xa0] ss:$8 sps:$4 sm:$0xff]  }
 0x2d0   : > { %v2591_v17 = vpack.c.bf16 %v2567_v46, %v2563_v10  ;;  %v2536_v52 = vadd.f32 %v2535_v14, %v2463_v8  ;;  %v2570_v38 = vmax.f32 %v2534_v30, 0.0  ;;  %v4827_v10 = vld [vmem:[#allocation10 + $0xe0] ss:$8 sps:$4 sm:$0xff]   ;;  %v4832_v46 = vld [vmem:[#allocation10 + $0xd4] ss:$8 sps:$4 sm:$0xff]  }
 0x2d1   : > { %v2537_v62 = vpop.f32.mrf.mxu1  ;;  %3377 = vmatpush1.bf16.msra.mxu0 %v4809_v59  ;;  %v4835_v13 = vld [vmem:[#allocation10 + $0xc4] ss:$8 sps:$4 sm:$0xff]   ;;  %v4833_v14 = vld [vmem:[#allocation10 + $0xc0] ss:$8 sps:$4 sm:$0xff]   ;;  %v4838_v8 = vld [vmem:[#allocation10 + $0xb4] ss:$8 sps:$4 sm:$0xff]  }
 0x2d2   : > { %v2538_v29 = vadd.f32 %v2537_v62, %v2465_v25  ;;  %3111 = vmatprep.mubr.bf16.mxu1 %v2591_v17  ;;  %v2571_v33 = vmax.f32 %v2536_v52, 0.0  ;;  %3378 = vmatprep.subr.bf16.mxu0 %v4814_v60  ;;  %v4836_v25 = vld [vmem:[#allocation10 + $0xb0] ss:$8 sps:$4 sm:$0xff]   ;;  %v4841_v17 = vld [vmem:[#allocation10 + $0xa4] ss:$8 sps:$4 sm:$0xff]  }
 0x2d3   : > { %v2539_v31 = vpop.f32.mrf.mxu1  ;;  %3112 = vmatmul.mubr.bf16.gmra.mxu1 %v2590_v23  ;;  %v4844_v23 = vld [vmem:[#allocation10 + $0x94] ss:$8 sps:$4 sm:$0xff]   ;;  %v4842_v62 = vld [vmem:[#allocation10 + $0x90] ss:$8 sps:$4 sm:$0xff]   ;;  %v4845_v52 = vld [vmem:[#allocation10 + $0x80] ss:$8 sps:$4 sm:$0xff]  }
 0x2d4   : > { %v2540_v1 = vadd.f32 %v2539_v31, %v2467_v27  ;;  %v2574_v32 = vmax.f32 %v2538_v29, 0.0  ;;  %v4847_v27 = vld [vmem:[#allocation10 + $0x84] ss:$8 sps:$4 sm:$0xff]   ;;  %v4848_v29 = vld [vmem:[#allocation12 + $0x78] sm:$0xff]   ;;  %v4850_v30 = vld [vmem:[#allocation12 + $0x70] sm:$0xff]  }
 0x2d5   : > { %v2543_v6 = vpop.f32.mrf.mxu1  ;;  %3379 = vmatpush1.bf16.msra.mxu0 %v4812_v61  ;;  %4216 = vmatprep.subr.bf16.mxu1 %v4848_v29  ;;  %v4851_v31 = vld [vmem:[#allocation12 + $0x30] sm:$0xff]  }
 0x2d6   : > { %v2575_v0 = vmax.f32 %v2540_v1, 0.0  ;;  %v2594_v44 = vpack.c.bf16 %v2574_v32, %v2570_v38  ;;  %v2544_v37 = vadd.f32 %v2543_v6, %v2471_v49  ;;  %3380 = vmatprep.subr.bf16.mxu0 %v4817_v22  ;;  %4217 = vmatpush3.bf16.msra.mxu1 %v4849_v26  ;;  %v4852_v1 = vld [vmem:[#allocation12 + $0x68] sm:$0xff]   ;;  %v4854_v6 = vld [vmem:[#allocation12 + $0x60] sm:$0xff]  }
 0x2d7   : > { %v2545_v41 = vpop.f32.mrf.mxu1  ;;  %4218 = vmatprep.subr.bf16.mxu1 %v4850_v30  ;;  %v4853_v32 = vld [vmem:[#allocation12 + $0x28] sm:$0xff]  }
 0x2d8   : > { %v2595_v42 = vpack.c.bf16 %v2575_v0, %v2571_v33  ;;  %v2546_v12 = vadd.f32 %v2545_v41, %v2473_v28  ;;  %v2578_v35 = vmax.f32 %v2544_v37, 0.0  ;;  %v4855_v33 = vld [vmem:[#allocation12 + $0x20] sm:$0xff]   ;;  %v4856_v0 = vld [vmem:[#allocation12 + $0x58] sm:$0xff]  }
 0x2d9   : > { %v2547_v51 = vpop.f32.mrf.mxu1  ;;  %3381 = vmatpush1.bf16.msra.mxu0 %v4815_v2 }
 0x2da   : > { %v2548_v47 = vadd.f32 %v2547_v51, %v2475_v39  ;;  %3121 = vmatprep.mubr.bf16.mxu1 %v2595_v42  ;;  %v2579_v55 = vmax.f32 %v2546_v12, 0.0  ;;  %3382 = vmatprep.subr.bf16.mxu0 %v4820_v3 }
 0x2db   : > { %v2549_v48 = vpop.f32.mrf.mxu1  ;;  %3122 = vmatmul.mubr.bf16.gmra.mxu1 %v2594_v44  ;;  %v2664_v44 = vld [vmem:[%s5696_s6] sm:$0x3] }
 0x2dc   : > { %v2550_v63 = vadd.f32 %v2549_v48, %v2477_v36  ;;  %v2582_v54 = vmax.f32 %v2548_v47, 0.0  ;;  %4219 = vmatpush3.bf16.msra.mxu1 %v4851_v31  ;;  %v5643_v36 = vrot.slane %v2664_v44, %v5458_v20  ;;  %v5646_v12 = vrot.slane %v2664_v44, %v5461_v21 }
 0x2dd   : > { %3383 = vmatpush1.bf16.msra.mxu0 %v4818_v11  ;;  %4220 = vmatprep.subr.bf16.mxu1 %v4852_v1 }
 0x2de   : > { %v2583_v56 = vmax.f32 %v2550_v63, 0.0  ;;  %v2598_v9 = vpack.c.bf16 %v2582_v54, %v2578_v35  ;;  %3384 = vmatprep.subr.bf16.mxu0 %v4823_v4 }
 0x2e0   : > { %v2599_v24 = vpack.c.bf16 %v2583_v56, %v2579_v55  ;;  %4221 = vmatpush3.bf16.msra.mxu1 %v4853_v32 }
 0x2e1   : > { %3385 = vmatpush1.bf16.msra.mxu0 %v4821_v53  ;;  %4222 = vmatprep.subr.bf16.mxu1 %v4854_v6 }
 0x2e2   : > { %3131 = vmatprep.mubr.bf16.mxu1 %v2599_v24  ;;  %3386 = vmatprep.subr.bf16.mxu0 %v4826_v45 }
 0x2e3   : > { %3132 = vmatmul.mubr.bf16.gmra.mxu1 %v2598_v9 }
 0x2e4   : > { %4223 = vmatpush3.bf16.msra.mxu1 %v4855_v33 }
 0x2e5   : > { %3387 = vmatpush2.bf16.msra.mxu0 %v4824_v5  ;;  %4224 = vmatprep.subr.bf16.mxu1 %v4856_v0 }
 0x2e6   : > { %3388 = vmatprep.subr.bf16.mxu0 %v4829_v7 }
 0x2e8   : > { %4225 = vmatpush3.bf16.msra.mxu1 %v4857_v34 }
 0x2e9   : > { %3389 = vmatpush2.bf16.msra.mxu0 %v4827_v10 }
 0x2ea   : > { %3390 = vmatprep.subr.bf16.mxu0 %v4832_v46 }
 0x2ed   : > { %3391 = vmatpush2.bf16.msra.mxu0 %v4830_v15 }
 0x2ee   : > { %3392 = vmatprep.subr.bf16.mxu0 %v4835_v13 }
 0x2f1   : > { %3393 = vmatpush2.bf16.msra.mxu0 %v4833_v14 }
 0x2f2   : > { %3394 = vmatprep.subr.bf16.mxu0 %v4838_v8 }
 0x2f5   : > { %3395 = vmatpush2.bf16.msra.mxu0 %v4836_v25 }
 0x2f6   : > { %3396 = vmatprep.subr.bf16.mxu0 %v4841_v17 }
 0x2f9   : > { %3397 = vmatpush2.bf16.msra.mxu0 %v4839_v18 }
 0x2fa   : > { %3398 = vmatprep.subr.bf16.mxu0 %v4844_v23 }
 0x2fd   : > { %3399 = vmatpush2.bf16.msra.mxu0 %v4842_v62 }
 0x2fe   : > { %3400 = vmatprep.subr.bf16.mxu0 %v4847_v27 }
 0x301   : > { %3401 = vmatpush2.bf16.msra.mxu0 %v4845_v52 }
 0x34b   : > { %v3030_v38 = vpop.f32.mrf.mxu0 }
 0x34c   : > { %v3031_v50 = vadd.f32 %v3030_v38, %v5646_v12 }
 0x34d   : > { %v3032_v41 = vpop.f32.mrf.mxu0 }
 0x34e   : > { %v3033_v40 = vadd.f32 %v3032_v41, %v5643_v36 }
 0x34f   : > { %v3034_v19 = vpop.f32.mrf.mxu0 }
 0x350   : > { %v3035_v63 = vadd.f32 %v3034_v19, %v5646_v12 }
 0x351   : > { %v3036_v28 = vpop.f32.mrf.mxu0 }
 0x352   : > { %v3037_v55 = vadd.f32 %v3036_v28, %v5643_v36 }
 0x353   : > { %v3040_v39 = vpop.f32.mrf.mxu0 }
 0x354   : > { %v3041_v45 = vadd.f32 %v3040_v39, %v5646_v12 }
 0x355   : > { %v3042_v42 = vpop.f32.mrf.mxu0 }
 0x356   : > { %v3043_v11 = vadd.f32 %v3042_v42, %v5643_v36 }
 0x357   : > { %v3044_v43 = vpop.f32.mrf.mxu0 }
 0x358   : > { %v3045_v4 = vadd.f32 %v3044_v43, %v5646_v12 }
 0x359   : > { %v3046_v49 = vpop.f32.mrf.mxu0 }
 0x35a   : > { %v3047_v10 = vadd.f32 %v3046_v49, %v5643_v36 }
 0x35b   : > { %v3050_v51 = vpop.f32.mrf.mxu0 }
 0x35c   : > { %v3051_v1 = vadd.f32 %v3050_v51, %v5646_v12 }
 0x35d   : > { %v3052_v37 = vpop.f32.mrf.mxu0 }
 0x35e   : > { %v3053_v26 = vadd.f32 %v3052_v37, %v5643_v36 }
 0x35f   : > { %v3054_v16 = vpop.f32.mrf.mxu0 }
 0x360   : > { %v3055_v30 = vadd.f32 %v3054_v16, %v5646_v12 }
 0x361   : > { %v3056_v2 = vpop.f32.mrf.mxu0 }
 0x362   : > { %v3057_v33 = vadd.f32 %v3056_v2, %v5643_v36 }
 0x363   : > { %v3060_v13 = vpop.f32.mrf.mxu0 }
 0x365   : > { %v3062_v27 = vpop.f32.mrf.mxu0 }
 0x366   : > { %v3063_v51 = vadd.f32 %v3062_v27, %v5643_v36 }
 0x367   : > { %v3064_v38 = vpop.f32.mrf.mxu0 }
 0x369   : > { %v3066_v44 = vpop.f32.mrf.mxu0 }
 0x38b   : > { %v3103_v47 = vpop.f32.mrf.mxu1 }
 0x38c   : > { %v3104_v24 = vadd.f32 %v3103_v47, %v3031_v50 }
 0x38d   : > { %v3105_v48 = vpop.f32.mrf.mxu1 }
 0x38e   : > { %v3106_v56 = vadd.f32 %v3105_v48, %v3033_v40  ;;  %v3142_v22 = vmax.f32 %v3104_v24, 0.0  ;;  %v3065_v48 = vadd.f32 %v3064_v38, %v5646_v12 }
 0x38f   : > { %v3107_v54 = vpop.f32.mrf.mxu1 }
 0x390   : > { %v3108_v35 = vadd.f32 %v3107_v54, %v3035_v63  ;;  %v3143_v60 = vmax.f32 %v3106_v56, 0.0  ;;  %v3061_v63 = vadd.f32 %v3060_v13, %v5646_v12  ;;  %v4858_v12 = vld [vmem:[#allocation12 + $0x50] sm:$0xff]  }
 0x391   : > { %v3109_v57 = vpop.f32.mrf.mxu1  ;;  %4226 = vmatprep.subr.bf16.mxu1 %v4858_v12 }
 0x392   : > { %v3110_v9 = vadd.f32 %v3109_v57, %v3037_v55  ;;  %v3144_v58 = vmax.f32 %v3108_v35, 0.0  ;;  %v3067_v55 = vadd.f32 %v3066_v44, %v5643_v36  ;;  %v4860_v36 = vld [vmem:[#allocation12 + $0x48] sm:$0xff]  }
 0x393   : > { %v3113_v59 = vpop.f32.mrf.mxu1 }
 0x394   : > { %v3145_v61 = vmax.f32 %v3110_v9, 0.0  ;;  %v3158_v5 = vpack.c.bf16 %v3144_v58, %v3142_v22  ;;  %v3114_v14 = vadd.f32 %v3113_v59, %v3041_v45  ;;  %v4859_v22 = vld [vmem:[#allocation12 + $0x10] sm:$0xff]  }
 0x395   : > { %v3115_v3 = vpop.f32.mrf.mxu1  ;;  %4227 = vmatpush3.bf16.msra.mxu1 %v4859_v22 }
 0x396   : > { %v3159_v53 = vpack.c.bf16 %v3145_v61, %v3143_v60  ;;  %v3116_v46 = vadd.f32 %v3115_v3, %v3043_v11  ;;  %v3146_v52 = vmax.f32 %v3114_v14, 0.0  ;;  %v4861_v3 = vld [vmem:[#allocation12 + $0x8] sm:$0xff]   ;;  %4228 = vmatprep.subr.bf16.mxu1 %v4860_v36  ;;  %v4862_v11 = vld [vmem:[#allocation12 + $0x40] sm:$0xff]   ;;  %v4189_v36 = vld [vmem:[%s5700_s10] ss:$0 sm:$0xff] }
 0x397   : > { %v3117_v7 = vpop.f32.mrf.mxu1 }
 0x398   : > { %v3118_v15 = vadd.f32 %v3117_v7, %v3045_v4  ;;  %3402 = vmatprep.mubr.bf16.mxu0 %v3159_v53  ;;  %v3147_v23 = vmax.f32 %v3116_v46, 0.0  ;;  %v4863_v4 = vld [vmem:[#allocation12] sm:$0xff]   ;;  %v3198_v53 = vld [vmem:[%s5698_s8] sm:$0x3] }
 0x399   : > { %v3119_v8 = vpop.f32.mrf.mxu1  ;;  %3403 = vmatmul.mubr.bf16.vlgmr.msra.gmra.mxu0 %v3158_v5  ;;  %4229 = vmatpush3.bf16.msra.mxu1 %v4861_v3  ;;  %v3207_v5 = vrot.slane %v3198_v53, %v5458_v20  ;;  %v3203_v7 = vrot.slane %v3198_v53, %v5461_v21 }
 0x39a   : > { %v3120_v25 = vadd.f32 %v3119_v8, %v3047_v10  ;;  %v3148_v17 = vmax.f32 %v3118_v15, 0.0  ;;  %4230 = vmatprep.subr.bf16.mxu1 %v4862_v11 }
 0x39b   : > { %v3123_v18 = vpop.f32.mrf.mxu1 }
 0x39c   : > { %v3149_v62 = vmax.f32 %v3120_v25, 0.0  ;;  %v3160_v32 = vpack.c.bf16 %v3148_v17, %v3146_v52  ;;  %v3124_v41 = vadd.f32 %v3123_v18, %v3051_v1 }
 0x39d   : > { %v3125_v29 = vpop.f32.mrf.mxu1  ;;  %4231 = vmatpush3.bf16.msra.mxu1 %v4863_v4 }
 0x39e   : > { %v3161_v31 = vpack.c.bf16 %v3149_v62, %v3147_v23  ;;  %v3126_v0 = vadd.f32 %v3125_v29, %v3053_v26  ;;  %v3150_v47 = vmax.f32 %v3124_v41, 0.0 }
 0x39f   : > { %v3127_v6 = vpop.f32.mrf.mxu1 }
 0x3a0   : > { %v3128_v34 = vadd.f32 %v3127_v6, %v3055_v30  ;;  %3412 = vmatprep.mubr.bf16.mxu0 %v3161_v31  ;;  %v3151_v43 = vmax.f32 %v3126_v0, 0.0 }
 0x3a1   : > { %v3129_v19 = vpop.f32.mrf.mxu1  ;;  %3413 = vmatmul.mubr.bf16.gmra.mxu0 %v3160_v32 }
 0x3a2   : > { %v3130_v28 = vadd.f32 %v3129_v19, %v3057_v33  ;;  %v3152_v39 = vmax.f32 %v3128_v34, 0.0 }
 0x3a3   : > { %v3133_v42 = vpop.f32.mrf.mxu1 }
 0x3a4   : > { %v3153_v49 = vmax.f32 %v3130_v28, 0.0  ;;  %v3162_v50 = vpack.c.bf16 %v3152_v39, %v3150_v47  ;;  %v3134_v16 = vadd.f32 %v3133_v42, %v3061_v63 }
 0x3a5   : > { %v3135_v37 = vpop.f32.mrf.mxu1 }
 0x3a6   : > { %v3163_v40 = vpack.c.bf16 %v3153_v49, %v3151_v43  ;;  %v3136_v56 = vadd.f32 %v3135_v37, %v3063_v51  ;;  %v3154_v60 = vmax.f32 %v3134_v16, 0.0 }
 0x3a7   : > { %v3137_v54 = vpop.f32.mrf.mxu1 }
 0x3a8   : > { %v3138_v35 = vadd.f32 %v3137_v54, %v3065_v48  ;;  %3422 = vmatprep.mubr.bf16.mxu0 %v3163_v40  ;;  %v3155_v58 = vmax.f32 %v3136_v56, 0.0 }
 0x3a9   : > { %v3139_v24 = vpop.f32.mrf.mxu1  ;;  %3423 = vmatmul.mubr.bf16.gmra.mxu0 %v3162_v50 }
 0x3aa   : > { %v3140_v57 = vadd.f32 %v3139_v24, %v3067_v55  ;;  %v3156_v9 = vmax.f32 %v3138_v35, 0.0 }
 0x3ac   : > { %v3157_v59 = vmax.f32 %v3140_v57, 0.0  ;;  %v3164_v2 = vpack.c.bf16 %v3156_v9, %v3154_v60 }
 0x3ae   : > { %v3165_v61 = vpack.c.bf16 %v3157_v59, %v3155_v58 }
 0x3b0   : > { %3432 = vmatprep.mubr.bf16.mxu0 %v3165_v61 }
 0x3b1   : > { %3433 = vmatmul.mubr.bf16.gmra.mxu0 %v3164_v2 }
 0x459   : > { %v3404_v45 = vpop.f32.mrf.mxu0 }
 0x45a   : > { %v3405_v14 = vadd.f32 %v3404_v45, %v3203_v7 }
 0x45b   : > { %v3406_v10 = vpop.f32.mrf.mxu0 }
 0x45c   : > { %v3407_v15 = vadd.f32 %v3406_v10, %v3207_v5  ;;  %v3443_v27 = vmax.f32 %v3405_v14, 0.0 }
 0x45d   : > { %v3408_v46 = vpop.f32.mrf.mxu0 }
 0x45e   : > { %v3409_v13 = vadd.f32 %v3408_v46, %v3203_v7  ;;  %v3444_v23 = vmax.f32 %v3407_v15, 0.0 }
 0x45f   : > { %v3410_v8 = vpop.f32.mrf.mxu0 }
 0x460   : > { %v3411_v25 = vadd.f32 %v3410_v8, %v3207_v5  ;;  %v3445_v17 = vmax.f32 %v3409_v13, 0.0 }
 0x461   : > { %v3414_v18 = vpop.f32.mrf.mxu0 }
 0x462   : > { %v3446_v62 = vmax.f32 %v3411_v25, 0.0  ;;  %v3459_v26 = vpack.c.bf16 %v3445_v17, %v3443_v27  ;;  %v3415_v21 = vadd.f32 %v3414_v18, %v3203_v7 }
 0x463   : > { %v3416_v52 = vpop.f32.mrf.mxu0 }
 0x464   : > { %v3460_v29 = vpack.c.bf16 %v3446_v62, %v3444_v23  ;;  %v3417_v31 = vadd.f32 %v3416_v52, %v3207_v5  ;;  %v3447_v38 = vmax.f32 %v3415_v21, 0.0 }
 0x465   : > { %v3418_v30 = vpop.f32.mrf.mxu0 }
 0x466   : > { %v3419_v20 = vadd.f32 %v3418_v30, %v3203_v7  ;;  %3634 = vmatprep.mubr.bf16.mxu1 %v3460_v29  ;;  %v3448_v0 = vmax.f32 %v3417_v31, 0.0 }
 0x467   : > { %v3420_v1 = vpop.f32.mrf.mxu0  ;;  %3635 = vmatmul.mubr.bf16.vlgmr.msra.gmra.mxu1 %v3459_v26 }
 0x468   : > { %v3421_v32 = vadd.f32 %v3420_v1, %v3207_v5  ;;  %v3449_v6 = vmax.f32 %v3419_v20, 0.0 }
 0x469   : > { %v3424_v33 = vpop.f32.mrf.mxu0 }
 0x46a   : > { %v3450_v34 = vmax.f32 %v3421_v32, 0.0  ;;  %v3461_v28 = vpack.c.bf16 %v3449_v6, %v3447_v38  ;;  %v3425_v49 = vadd.f32 %v3424_v33, %v3203_v7 }
 0x46b   : > { %v3426_v41 = vpop.f32.mrf.mxu0 }
 0x46c   : > { %v3462_v19 = vpack.c.bf16 %v3450_v34, %v3448_v0  ;;  %v3427_v42 = vadd.f32 %v3426_v41, %v3207_v5  ;;  %v3451_v63 = vmax.f32 %v3425_v49, 0.0 }
 0x46d   : > { %v3428_v39 = vpop.f32.mrf.mxu0 }
 0x46e   : > { %v3429_v43 = vadd.f32 %v3428_v39, %v3203_v7  ;;  %3642 = vmatprep.mubr.bf16.mxu1 %v3462_v19  ;;  %v3452_v48 = vmax.f32 %v3427_v42, 0.0 }
 0x46f   : > { %v3430_v44 = vpop.f32.mrf.mxu0  ;;  %3643 = vmatmul.mubr.bf16.gmra.mxu1 %v3461_v28 }
 0x470   : > { %v3431_v47 = vadd.f32 %v3430_v44, %v3207_v5  ;;  %v3453_v37 = vmax.f32 %v3429_v43, 0.0 }
 0x471   : > { %v3434_v51 = vpop.f32.mrf.mxu0 }
 0x472   : > { %v3454_v40 = vmax.f32 %v3431_v47, 0.0  ;;  %v3463_v55 = vpack.c.bf16 %v3453_v37, %v3451_v63  ;;  %v3435_v24 = vadd.f32 %v3434_v51, %v3203_v7 }
 0x473   : > { %v3436_v50 = vpop.f32.mrf.mxu0 }
 0x474   : > { %v3464_v54 = vpack.c.bf16 %v3454_v40, %v3452_v48  ;;  %v3437_v35 = vadd.f32 %v3436_v50, %v3207_v5  ;;  %v3455_v61 = vmax.f32 %v3435_v24, 0.0 }
 0x475   : > { %v3438_v56 = vpop.f32.mrf.mxu0 }
 0x476   : > { %v3439_v16 = vadd.f32 %v3438_v56, %v3203_v7  ;;  %3650 = vmatprep.mubr.bf16.mxu1 %v3464_v54  ;;  %v3456_v59 = vmax.f32 %v3437_v35, 0.0 }
 0x477   : > { %v3440_v57 = vpop.f32.mrf.mxu0  ;;  %3651 = vmatmul.mubr.bf16.gmra.mxu1 %v3463_v55 }
 0x478   : > { %v3441_v9 = vadd.f32 %v3440_v57, %v3207_v5  ;;  %v3457_v58 = vmax.f32 %v3439_v16, 0.0 }
 0x47a   : > { %v3458_v60 = vmax.f32 %v3441_v9, 0.0  ;;  %v3465_v12 = vpack.c.bf16 %v3457_v58, %v3455_v61 }
 0x47c   : > { %v3466_v2 = vpack.c.bf16 %v3458_v60, %v3456_v59 }
 0x47e   : > { %3658 = vmatprep.mubr.bf16.mxu1 %v3466_v2 }
 0x47f   : > { %3659 = vmatmul.mubr.bf16.gmra.mxu1 %v3465_v12 }
 0x527   : > { %v4232_v22 = vpop.f32.mrf.mxu1 }
 0x529   : > { %v4233_v3 = vpop.f32.mrf.mxu1 }
 0x52a   : > { %v4234_v11 = vadd.f32 %v4233_v3, %v4232_v22 }
 0x52b   : > { %v4235_v4 = vpop.f32.mrf.mxu1 }
 0x52c   : > { %v3637_v53 = vadd.f32 %v4234_v11, %v4189_v36 }
 0x52d   : > { %v4236_v45 = vpop.f32.mrf.mxu1 }
 0x52e   : > { %v4206_v7 = vmul.f32 -1.442695, %v3637_v53  ;;  %v4237_v5 = vadd.f32 %v4236_v45, %v4235_v4 }
 0x52f   : > { %v4238_v10 = vpop.f32.mrf.mxu1 }
 0x530   : > { %4864 = vpow2.f32 %v4206_v7  ;;  %v3640_v46 = vadd.f32 %v4237_v5, %v4189_v36 }
 0x531   : > { %v4239_v15 = vpop.f32.mrf.mxu1 }
 0x532   : > { %v4207_v13 = vmul.f32 -1.442695, %v3640_v46  ;;  %v4240_v14 = vadd.f32 %v4239_v15, %v4238_v10 }
 0x533   : > { %v4241_v8 = vpop.f32.mrf.mxu1 }
 0x534   : > { %4866 = vpow2.f32 %v4207_v13  ;;  %v3645_v25 = vadd.f32 %v4240_v14, %v4189_v36 }
 0x535   : > { %v4242_v17 = vpop.f32.mrf.mxu1 }
 0x536   : > { %v4208_v18 = vmul.f32 -1.442695, %v3645_v25  ;;  %v4243_v23 = vadd.f32 %v4242_v17, %v4241_v8 }
 0x537   : > { %v4244_v62 = vpop.f32.mrf.mxu1 }
 0x538   : > { %4868 = vpow2.f32 %v4208_v18  ;;  %v3648_v27 = vadd.f32 %v4243_v23, %v4189_v36 }
 0x539   : > { %v4245_v52 = vpop.f32.mrf.mxu1 }
 0x53a   : > { %v4209_v29 = vmul.f32 -1.442695, %v3648_v27  ;;  %v4246_v26 = vadd.f32 %v4245_v52, %v4244_v62 }
 0x53b   : > { %v4247_v30 = vpop.f32.mrf.mxu1 }
 0x53c   : > { %4870 = vpow2.f32 %v4209_v29  ;;  %v3653_v31 = vadd.f32 %v4246_v26, %v4189_v36 }
 0x53d   : > { %v4865_v20 = vpop.eup %4864  ;;  %v4248_v21 = vpop.f32.mrf.mxu1 }
 0x53e   : > { %v3691_v1 = vadd.f32 1.0, %v4865_v20  ;;  %v4210_v32 = vmul.f32 -1.442695, %v3653_v31  ;;  %v4249_v6 = vadd.f32 %v4248_v21, %v4247_v30 }
 0x53f   : > { %v4250_v33 = vpop.f32.mrf.mxu1 }
 0x540   : > { %4872 = vrcp.f32 %v3691_v1  ;;  %v3656_v0 = vadd.f32 %v4249_v6, %v4189_v36 }
 0x541   : > { %v4867_v34 = vpop.eup %4866  ;;  %4874 = vpow2.f32 %v4210_v32  ;;  %v4251_v38 = vpop.f32.mrf.mxu1 }
 0x542   : > { %v3692_v41 = vadd.f32 1.0, %v4867_v34  ;;  %v4211_v19 = vmul.f32 -1.442695, %v3656_v0  ;;  %v4252_v28 = vadd.f32 %v4251_v38, %v4250_v33 }
 0x543   : > { %v4253_v39 = vpop.f32.mrf.mxu1 }
 0x544   : > { %4876 = vrcp.f32 %v3692_v41  ;;  %v3661_v42 = vadd.f32 %v4252_v28, %v4189_v36 }
 0x545   : > { %v4869_v43 = vpop.eup %4868  ;;  %4878 = vpow2.f32 %v4211_v19  ;;  %v4254_v49 = vpop.f32.mrf.mxu1 }
 0x546   : > { %v3693_v44 = vadd.f32 1.0, %v4869_v43  ;;  %v4212_v47 = vmul.f32 -1.442695, %v3661_v42  ;;  %v4255_v37 = vadd.f32 %v4254_v49, %v4253_v39 }
 0x548   : > { %4880 = vrcp.f32 %v3693_v44  ;;  %v3664_v51 = vadd.f32 %v4255_v37, %v4189_v36 }
 0x549   : > { %v4871_v48 = vpop.eup %4870  ;;  %4882 = vpow2.f32 %v4212_v47 }
 0x54a   : > { %v3694_v40 = vadd.f32 1.0, %v4871_v48  ;;  %v4213_v63 = vmul.f32 -1.442695, %v3664_v51 }
 0x54c   : > { %4884 = vrcp.f32 %v3694_v40 }
 0x54d   : > { %v4873_v50 = vpop.eup %4872  ;;  %4886 = vpow2.f32 %v4213_v63 }
 0x54e   : > { %v4875_v54 = vpop.eup %4874  ;;  %3715 = vst [vmem:[%s493_s30] sm:$0xff] %v4873_v50 }
 0x54f   : > { %v3695_v55 = vadd.f32 1.0, %v4875_v54 }
 0x551   : > { %v4877_v56 = vpop.eup %4876  ;;  %4888 = vrcp.f32 %v3695_v55 }
 0x552   : > { %v4879_v35 = vpop.eup %4878  ;;  %3716 = vst [vmem:[%s493_s30 + $0x8] sm:$0xff] %v4877_v56 }
 0x553   : > { %v3696_v16 = vadd.f32 1.0, %v4879_v35 }
 0x555   : > { %v4881_v24 = vpop.eup %4880  ;;  %4890 = vrcp.f32 %v3696_v16 }
 0x556   : > { %v4883_v57 = vpop.eup %4882  ;;  %3717 = vst [vmem:[%s493_s30 + $0x10] sm:$0xff] %v4881_v24 }
 0x557   : > { %v3697_v9 = vadd.f32 1.0, %v4883_v57 }
 0x559   : > { %v4885_v58 = vpop.eup %4884  ;;  %4892 = vrcp.f32 %v3697_v9 }
 0x55a   : > { %v4887_v59 = vpop.eup %4886  ;;  %3718 = vst [vmem:[%s493_s30 + $0x18] sm:$0xff] %v4885_v58 }
 0x55b   : > { %v3698_v60 = vadd.f32 1.0, %v4887_v59 }
 0x55d   : > { %4894 = vrcp.f32 %v3698_v60 }
 0x55e   : > { %v4889_v61 = vpop.eup %4888 }
 0x55f   : > { %3719 = vst [vmem:[%s493_s30 + $0x20] sm:$0xff] %v4889_v61 }
 0x562   : > { %v4891_v2 = vpop.eup %4890 }
 0x563   : > { %3720 = vst [vmem:[%s493_s30 + $0x28] sm:$0xff] %v4891_v2 }
 0x566   : > { %v4893_v12 = vpop.eup %4892 }
 0x567   : > { %3721 = vst [vmem:[%s493_s30 + $0x30] sm:$0xff] %v4893_v12 }
 0x56a   : > { %v4895_v22 = vpop.eup %4894 }
 0x56b   : > { %3722 = vst [vmem:[%s493_s30 + $0x38] sm:$0xff] %v4895_v22 }
 0x56c PF: > { %p24_p12 = scmp.ge.s32.totalorder %s5300_s13, 6   ;;  %s5722_s17 = smov %s5118_s18 }
 0x56d   : > { %s5723_s18 = smov %s5122_s19  ;;  %s5724_s19 = smov %s5312_s14 }
 0x56e   : > { %s5725_s20 = smov %s5300_s13  ;;  %26 = sbr.rel (!%p24_p12) target bundleno = 9 (0x9), region = 128 }
 0x573   :  { %3745 = vsyncpa [#allocation3], 1 }
 0x574   :  { %3747 = vsyncpa [#allocation3 + $0x1], 1 }
 0x575   :  { %3748 = vsyncpa [#allocation5], 1 }
 0x576   :  { %3749 = vsyncpa [#allocation8], 1 }
 0x577   :  { %3750 = vsyncpa [#allocation11], 1 }

</bundles_post_ra>
